<compile_context>
chip_gen: v5e
topology: v5e:2x2
jax: 0.10.0
libtpu: 0.0.40
codegen_flags: <defaults>
</compile_context>

<pallas_src>
import functools

import jax
import jax.numpy as jnp
from jax.experimental import pallas as pl
from jax.experimental.pallas import tpu as pltpu


def _round_up(x, m):
    return ((x + m - 1) // m) * m


def transact_kernel(x_ref, madd_ref, mcol_ref, w_ref, v_ref, o_ref, *, D, Dp, FFp):
    TB, L, _ = x_ref.shape
    M = TB * L

    # ---- static, 128-aligned column slices of the packed weight / vector slabs ----
    c = 0
    wqkv = w_ref[0:Dp, c:c + 3 * Dp]; c += 3 * Dp            # (Dp, 3*Dp) bf16
    wo   = w_ref[0:Dp, c:c + Dp];     c += Dp                # (Dp, Dp)
    w1   = w_ref[0:Dp, c:c + FFp];    c += FFp               # (Dp, FFp)
    w2   = w_ref[0:FFp, c:c + Dp];    c += Dp                # (FFp, Dp)
    wout = w_ref[0:Dp, c:c + Dp]                             # (Dp, Dp)

    c = 0
    bqkv = v_ref[:, c:c + 3 * Dp]; c += 3 * Dp
    bo   = v_ref[:, c:c + Dp]; c += Dp
    ln1w = v_ref[:, c:c + Dp]; c += Dp
    ln1b = v_ref[:, c:c + Dp]; c += Dp
    b1   = v_ref[:, c:c + FFp]; c += FFp
    b2   = v_ref[:, c:c + Dp]; c += Dp
    ln2w = v_ref[:, c:c + Dp]; c += Dp
    ln2b = v_ref[:, c:c + Dp]; c += Dp
    bout = v_ref[:, c:c + Dp]

    # lane mask: 1.0 for real model lanes (< D), 0.0 for the zero padding up to Dp
    lane = jax.lax.broadcasted_iota(jnp.int32, (1, Dp), 1)
    dmask = (lane < D).astype(jnp.float32)
    inv_d = 1.0 / float(D)

    def layernorm(h, w, b, eps=1e-5):
        mu = h.sum(axis=-1, keepdims=True) * inv_d
        diff = (h - mu) * dmask
        var = (diff * diff).sum(axis=-1, keepdims=True) * inv_d
        return diff * jax.lax.rsqrt(var + eps) * w + b       # padded lanes stay 0

    x2d = x_ref[...].reshape(M, Dp)                          # bf16, lanes >= D are zero
    x_f32 = x2d.astype(jnp.float32)                          # residual path

    # ---- fused QKV projection (1/sqrt(D) already folded into Wq / bq) ----
    qkv = jnp.dot(x2d, wqkv, preferred_element_type=jnp.float32) + bqkv
    q = qkv[:, 0:Dp].reshape(TB, L, Dp)
    k = qkv[:, Dp:2 * Dp].reshape(TB, L, Dp)
    v = qkv[:, 2 * Dp:3 * Dp].reshape(TB, L, Dp)

    # ---- single-head self attention (batched over the TB rows) ----
    scores = jnp.einsum('bqd,bkd->bqk', q, k,
                        preferred_element_type=jnp.float32)  # (TB, L, L)
    scores = scores + madd_ref[...][:, None, :]              # additive key-padding mask
    scores = scores - scores.max(axis=-1, keepdims=True)
    p = jnp.exp(scores)
    attn = p * pl.reciprocal(p.sum(axis=-1, keepdims=True), approx=True)
    ctx = jnp.einsum('bqk,bkd->bqd', attn, v,
                     preferred_element_type=jnp.float32).reshape(M, Dp)
    attn_out = jnp.dot(ctx.astype(jnp.bfloat16), wo,
                       preferred_element_type=jnp.float32) + bo

    # ---- post-LN encoder layer (norm_first=False, ReLU FFN) ----
    x1 = layernorm(x_f32 + attn_out, ln1w, ln1b)
    h = jnp.maximum(
        jnp.dot(x1.astype(jnp.bfloat16), w1, preferred_element_type=jnp.float32) + b1,
        0.0)
    ffo = jnp.dot(h.astype(jnp.bfloat16), w2, preferred_element_type=jnp.float32) + b2
    x2 = layernorm(x1 + ffo, ln2w, ln2b).reshape(TB, L, Dp)

    # ---- output head: zero-fill, last step, masked max-pool + out_linear ----
    pad = mcol_ref[...] > 0.5                                # (TB, L, 1)
    x2z = jnp.where(pad, 0.0, x2)
    last = x2z[:, L - 1, :]                                  # (TB, Dp)
    pooled_in = jnp.where(pad, -1e9, x2z).max(axis=1)        # (TB, Dp)
    pooled = jnp.dot(pooled_in.astype(jnp.bfloat16), wout,
                     preferred_element_type=jnp.float32) + bout

    o_ref[...] = jnp.concatenate([last, pooled], axis=-1)    # (TB, 2*Dp), lane-dense


def adjust_mask(mask):
    # True = padded; if a row is fully padded, un-mask its last position.
    fully = jnp.all(mask, axis=-1)
    return mask.at[:, -1].set(jnp.where(fully, False, mask[:, -1]))


def prepare_params(params, D, ff):
    """Pack / pre-scale / pad / cast params into one bf16 weight slab + one f32 vector slab."""
    (wq, bq, wk, bk, wv, bv, wo, bo,
     ln1w, ln1b, w1, b1, w2, b2, ln2w, ln2b, wout, bout) = params
    Dp = _round_up(D, 128)
    FFp = _round_up(ff, 128)
    Rp = max(Dp, FFp)
    s = 1.0 / jnp.sqrt(jnp.float32(D))

    def padw(w, rows, cols):
        return jnp.pad(w, ((0, rows - w.shape[0]), (0, cols - w.shape[1])))

    def padv(v, cols):
        return jnp.pad(v, ((0, 0), (0, cols - v.shape[1])))

    wslab = jnp.concatenate(
        [padw(wq * s, Rp, Dp), padw(wk, Rp, Dp), padw(wv, Rp, Dp),
         padw(wo, Rp, Dp), padw(w1, Rp, FFp), padw(w2, Rp, Dp),
         padw(wout, Rp, Dp)], axis=1).astype(jnp.bfloat16)

    vslab = jnp.concatenate(
        [padv(bq * s, Dp), padv(bk, Dp), padv(bv, Dp), padv(bo, Dp),
         padv(ln1w, Dp), padv(ln1b, Dp), padv(b1, FFp), padv(b2, Dp),
         padv(ln2w, Dp), padv(ln2b, Dp), padv(bout, Dp)],
        axis=1).astype(jnp.float32)
    return wslab, vslab, Dp, FFp


def transact_forward(target_emb, sequence_emb, mask, params, *, block_b=64):
    B, L, d_seq = sequence_emb.shape
    d_tgt = target_emb.shape[-1]
    D = d_seq + d_tgt
    ff = params[10].shape[1]                                  # w1 is (D, ff)

    wslab, vslab, Dp, FFp = prepare_params(params, D, ff)

    kpm = adjust_mask(mask)
    madd = jnp.where(kpm, -1e9, 0.0).astype(jnp.float32)      # (B, L) additive mask
    mcol = kpm.astype(jnp.float32)[:, :, None]                # (B, L, 1) pad indicator

    # Pre-concatenate sequence + broadcast target; zero-pad model dim to Dp; cast bf16.
    x = jnp.concatenate(
        [sequence_emb, jnp.broadcast_to(target_emb[:, None, :], (B, L, d_tgt))],
        axis=-1)
    x = jnp.pad(x, ((0, 0), (0, 0), (0, Dp - D))).astype(jnp.bfloat16)

    # Batch tile: sublane-aligned, large enough to amortize per-step overhead; keep the
    # grid length >= 2 when B allows it so v7x's two TensorCores both get work.
    TB = min(block_b, B)
    TB = _round_up(TB, 8)
    if (B + TB - 1) // TB < 2 and TB >= 16:
        TB = _round_up(TB // 2, 8)
    B_pad = _round_up(B, TB)
    grid = B_pad // TB

    def pad_b(a):
        if B_pad == B:
            return a
        return jnp.pad(a, [(0, B_pad - B)] + [(0, 0)] * (a.ndim - 1))

    x, madd, mcol = pad_b(x), pad_b(madd), pad_b(mcol)

    kernel = functools.partial(transact_kernel, D=D, Dp=Dp, FFp=FFp)

    out = pl.pallas_call(
        kernel,
        out_shape=jax.ShapeDtypeStruct((B_pad, 2 * Dp), jnp.float32),
        grid=(grid,),
        in_specs=[
            pl.BlockSpec((TB, L, Dp), lambda b: (b, 0, 0)),
            pl.BlockSpec((TB, L), lambda b: (b, 0)),
            pl.BlockSpec((TB, L, 1), lambda b: (b, 0, 0)),
            pl.BlockSpec(wslab.shape, lambda b: (0, 0)),
            pl.BlockSpec(vslab.shape, lambda b: (0, 0)),
        ],
        out_specs=pl.BlockSpec((TB, 2 * Dp), lambda b: (b, 0)),
        compiler_params=pltpu.CompilerParams(
            dimension_semantics=("parallel",),
            vmem_limit_bytes=32 * 1024 * 1024),
    )(x, madd, mcol, wslab, vslab)

    # Un-pad: real widths are D for the "last" half and D for the pooled half.
    return jnp.concatenate([out[:B, :D], out[:B, Dp:Dp + D]], axis=-1)


def make_params(key, D, ff):
    ks = jax.random.split(key, 8)
    scale = 0.1
    # PyTorch Linear stores W as (out, in); pre-transposed here to (in, out).
    wq = jax.random.normal(ks[0], (D, D), jnp.float32) * scale
    wk = jax.random.normal(ks[1], (D, D), jnp.float32) * scale
    wv = jax.random.normal(ks[2], (D, D), jnp.float32) * scale
    wo = jax.random.normal(ks[3], (D, D), jnp.float32) * scale
    w1 = jax.random.normal(ks[4], (D, ff), jnp.float32) * scale
    w2 = jax.random.normal(ks[5], (ff, D), jnp.float32) * scale
    wout = jax.random.normal(ks[6], (D, D), jnp.float32) * scale
    bkeys = jax.random.split(ks[7], 8)
    bq = jax.random.normal(bkeys[0], (1, D), jnp.float32) * scale
    bk = jax.random.normal(bkeys[1], (1, D), jnp.float32) * scale
    bv = jax.random.normal(bkeys[2], (1, D), jnp.float32) * scale
    bo = jax.random.normal(bkeys[3], (1, D), jnp.float32) * scale
    b1 = jax.random.normal(bkeys[4], (1, ff), jnp.float32) * scale
    b2 = jax.random.normal(bkeys[5], (1, D), jnp.float32) * scale
    bout = jax.random.normal(bkeys[6], (1, D), jnp.float32) * scale
    ln1w = jnp.ones((1, D), jnp.float32)
    ln1b = jnp.zeros((1, D), jnp.float32)
    ln2w = jnp.ones((1, D), jnp.float32)
    ln2b = jnp.zeros((1, D), jnp.float32)
    return (wq, bq, wk, bk, wv, bv, wo, bo,
            ln1w, ln1b, w1, b1, w2, b2, ln2w, ln2b, wout, bout)


def _layernorm_ref(h, w, b, eps=1e-5):
    mu = h.mean(axis=-1, keepdims=True)
    var = ((h - mu) ** 2).mean(axis=-1, keepdims=True)
    return (h - mu) * jax.lax.rsqrt(var + eps) * w + b


def reference_forward(target_emb, sequence_emb, mask, params):
    # Pure-JAX mirror of the kernel (same bf16 cast points, f32 accumulation, unpadded).
    B, L, d_seq = sequence_emb.shape
    d_tgt = target_emb.shape[-1]
    D = d_seq + d_tgt
    (wq, bq, wk, bk, wv, bv, wo, bo,
     ln1w, ln1b, w1, b1, w2, b2, ln2w, ln2b, wout, bout) = params
    s = 1.0 / jnp.sqrt(jnp.float32(D))
    kpm = adjust_mask(mask)

    x = jnp.concatenate(
        [sequence_emb, jnp.broadcast_to(target_emb[:, None, :], (B, L, d_tgt))],
        axis=-1).astype(jnp.bfloat16)
    x2d = x.reshape(B * L, D)
    xf = x2d.astype(jnp.float32)

    def mm(a, w, b):
        return jnp.dot(a.astype(jnp.bfloat16), w.astype(jnp.bfloat16),
                       preferred_element_type=jnp.float32) + b

    q = mm(x2d, wq * s, bq * s).reshape(B, L, D)
    k = mm(x2d, wk, bk).reshape(B, L, D)
    v = mm(x2d, wv, bv).reshape(B, L, D)

    sc = jnp.einsum('bqd,bkd->bqk', q, k, preferred_element_type=jnp.float32)
    sc = sc + jnp.where(kpm[:, None, :], -1e9, 0.0)
    a = jax.nn.softmax(sc, axis=-1)
    ctx = jnp.einsum('bqk,bkd->bqd', a, v,
                     preferred_element_type=jnp.float32).reshape(B * L, D)
    attn_out = mm(ctx, wo, bo)

    x1 = _layernorm_ref(xf + attn_out, ln1w, ln1b)
    h = jnp.maximum(mm(x1, w1, b1), 0.0)
    ffo = mm(h, w2, b2)
    x2 = _layernorm_ref(x1 + ffo, ln2w, ln2b).reshape(B, L, D)

    padm = kpm[:, :, None]
    x2z = jnp.where(padm, 0.0, x2)
    last = x2z[:, -1, :]
    pooled_in = jnp.where(padm, -1e9, x2z).max(axis=1)
    pooled = mm(pooled_in, wout, bout)
    return jnp.concatenate([last, pooled], axis=-1)


if __name__ == "__main__":
    B, L, d_seq, d_tgt, ff = 16, 8, 16, 16, 64
    D = d_seq + d_tgt
    key = jax.random.PRNGKey(0)
    k_in, k_p = jax.random.split(key)
    k1, k2, k3 = jax.random.split(k_in, 3)
    target_emb = jax.random.normal(k1, (B, d_tgt), jnp.float32)
    sequence_emb = jax.random.normal(k2, (B, L, d_seq), jnp.float32)

    mask = jax.random.bernoulli(k3, 0.3, (B, L))
    # row 0: last 3 positions padded; row 1: fully padded (exercises adjust_mask)
    mask = mask.at[0].set(jnp.array([False] * 5 + [True] * 3))
    mask = mask.at[1].set(jnp.ones((L,), jnp.bool_))

    params = make_params(k_p, D, ff)

    fwd = jax.jit(transact_forward)
    out = jax.block_until_ready(fwd(target_emb, sequence_emb, mask, params))

    ref = reference_forward(target_emb, sequence_emb, mask, params)
    assert out.shape == (B, 2 * D)
    assert jnp.allclose(out, ref, rtol=2e-2, atol=2e-2), (
        float(jnp.max(jnp.abs(out - ref))))
    print("KERNEL_OK")
</pallas_src>

<mosaic_0001>
module attributes {stable_mosaic.version = 11 : i64} {
  func.func @transact_kernel(%arg0: i32, %arg1: memref<8x8x128xbf16, #tpu.memory_space<vmem>>, %arg2: memref<8x8xf32, #tpu.memory_space<vmem>>, %arg3: memref<8x8x1xf32, #tpu.memory_space<vmem>>, %arg4: memref<128x896xbf16, #tpu.memory_space<vmem>>, %arg5: memref<1x1408xf32, #tpu.memory_space<vmem>>, %arg6: memref<8x256xf32, #tpu.memory_space<vmem>>) attributes {dimension_semantics = [#tpu.dimension_semantics<parallel>], iteration_bounds = array<i64: 2>, scalar_prefetch = 0 : i64, scratch_operands = 0 : i64, tpu.core_type = #tpu.core_type<tc>, window_params = [{transform_indices = @transform_0, window_bounds = array<i64: 8, 8, 128>}, {transform_indices = @transform_1, window_bounds = array<i64: 8, 8>}, {transform_indices = @transform_2, window_bounds = array<i64: 8, 8, 1>}, {pipeline_mode = #tpu.pipeline_mode<synchronous>, transform_indices = @transform_3, window_bounds = array<i64: 128, 896>}, {pipeline_mode = #tpu.pipeline_mode<synchronous>, transform_indices = @transform_4, window_bounds = array<i64: 1, 1408>}, {transform_indices = @transform_5, window_bounds = array<i64: 8, 256>}]} {
    %c0 = arith.constant 0 : index
    %c0_0 = arith.constant 0 : index
    %0 = vector.load %arg4[%c0, %c0_0] : memref<128x896xbf16, #tpu.memory_space<vmem>>, vector<128x384xbf16>
    %c0_1 = arith.constant 0 : index
    %c384 = arith.constant 384 : index
    %1 = vector.load %arg4[%c0_1, %c384] : memref<128x896xbf16, #tpu.memory_space<vmem>>, vector<128x128xbf16>
    %c0_2 = arith.constant 0 : index
    %c512 = arith.constant 512 : index
    %2 = vector.load %arg4[%c0_2, %c512] : memref<128x896xbf16, #tpu.memory_space<vmem>>, vector<128x128xbf16>
    %c0_3 = arith.constant 0 : index
    %c640 = arith.constant 640 : index
    %3 = vector.load %arg4[%c0_3, %c640] : memref<128x896xbf16, #tpu.memory_space<vmem>>, vector<128x128xbf16>
    %c0_4 = arith.constant 0 : index
    %c768 = arith.constant 768 : index
    %4 = vector.load %arg4[%c0_4, %c768] : memref<128x896xbf16, #tpu.memory_space<vmem>>, vector<128x128xbf16>
    %c0_5 = arith.constant 0 : index
    %c0_6 = arith.constant 0 : index
    %5 = vector.load %arg5[%c0_5, %c0_6] : memref<1x1408xf32, #tpu.memory_space<vmem>>, vector<1x384xf32>
    %c0_7 = arith.constant 0 : index
    %c384_8 = arith.constant 384 : index
    %6 = vector.load %arg5[%c0_7, %c384_8] : memref<1x1408xf32, #tpu.memory_space<vmem>>, vector<1x128xf32>
    %c0_9 = arith.constant 0 : index
    %c512_10 = arith.constant 512 : index
    %7 = vector.load %arg5[%c0_9, %c512_10] : memref<1x1408xf32, #tpu.memory_space<vmem>>, vector<1x128xf32>
    %c0_11 = arith.constant 0 : index
    %c640_12 = arith.constant 640 : index
    %8 = vector.load %arg5[%c0_11, %c640_12] : memref<1x1408xf32, #tpu.memory_space<vmem>>, vector<1x128xf32>
    %c0_13 = arith.constant 0 : index
    %c768_14 = arith.constant 768 : index
    %9 = vector.load %arg5[%c0_13, %c768_14] : memref<1x1408xf32, #tpu.memory_space<vmem>>, vector<1x128xf32>
    %c0_15 = arith.constant 0 : index
    %c896 = arith.constant 896 : index
    %10 = vector.load %arg5[%c0_15, %c896] : memref<1x1408xf32, #tpu.memory_space<vmem>>, vector<1x128xf32>
    %c0_16 = arith.constant 0 : index
    %c1024 = arith.constant 1024 : index
    %11 = vector.load %arg5[%c0_16, %c1024] : memref<1x1408xf32, #tpu.memory_space<vmem>>, vector<1x128xf32>
    %c0_17 = arith.constant 0 : index
    %c1152 = arith.constant 1152 : index
    %12 = vector.load %arg5[%c0_17, %c1152] : memref<1x1408xf32, #tpu.memory_space<vmem>>, vector<1x128xf32>
    %c0_18 = arith.constant 0 : index
    %c1280 = arith.constant 1280 : index
    %13 = vector.load %arg5[%c0_18, %c1280] : memref<1x1408xf32, #tpu.memory_space<vmem>>, vector<1x128xf32>
    %14 = tpu.iota {dimensions = array<i32: 1>} : vector<1x128xi32>
    %c32_i32 = arith.constant 32 : i32
    %15 = vector.broadcast %c32_i32 : i32 to vector<1x128xi32>
    %16 = arith.cmpi slt, %14, %15 : vector<1x128xi32>
    %17 = arith.extui %16 : vector<1x128xi1> to vector<1x128xi32>
    %18 = arith.sitofp %17 : vector<1x128xi32> to vector<1x128xf32>
    %c0_19 = arith.constant 0 : index
    %c0_20 = arith.constant 0 : index
    %c0_21 = arith.constant 0 : index
    %19 = vector.load %arg1[%c0_19, %c0_20, %c0_21] : memref<8x8x128xbf16, #tpu.memory_space<vmem>>, vector<8x8x128xbf16>
    %20 = vector.shape_cast %19 : vector<8x8x128xbf16> to vector<64x128xbf16>
    %21 = arith.extf %20 : vector<64x128xbf16> to vector<64x128xf32>
    %cst = arith.constant dense<0.000000e+00> : vector<64x384xf32>
    %22 = tpu.matmul %20, %0, %cst {dimension_numbers = #tpu.dot_dimension_numbers<[1], [0], [0], [1], [0, 0, 1, 1], [], []>} : vector<64x128xbf16>, vector<128x384xbf16>, vector<64x384xf32> -> vector<64x384xf32>
    %23 = vector.broadcast %5 : vector<1x384xf32> to vector<64x384xf32>
    %24 = arith.addf %22, %23 : vector<64x384xf32>
    %25 = vector.extract_strided_slice %24 {offsets = [0, 0], sizes = [64, 128], strides = [1, 1]} : vector<64x384xf32> to vector<64x128xf32>
    %26 = vector.shape_cast %25 : vector<64x128xf32> to vector<8x8x128xf32>
    %27 = vector.extract_strided_slice %24 {offsets = [0, 128], sizes = [64, 128], strides = [1, 1]} : vector<64x384xf32> to vector<64x128xf32>
    %28 = vector.shape_cast %27 : vector<64x128xf32> to vector<8x8x128xf32>
    %29 = vector.extract_strided_slice %24 {offsets = [0, 256], sizes = [64, 128], strides = [1, 1]} : vector<64x384xf32> to vector<64x128xf32>
    %30 = vector.shape_cast %29 : vector<64x128xf32> to vector<8x8x128xf32>
    "tpu.trace_start"() <{level = 10 : i32, message = "bqd,bkd->bqk"}> : () -> ()
    %cst_22 = arith.constant dense<0.000000e+00> : vector<8x8x8xf32>
    %31 = tpu.matmul %26, %28, %cst_22 {dimension_numbers = #tpu.dot_dimension_numbers<[2], [2], [1], [1], [0, 0, 0, 1, 1, 1], [0], [0]>} : vector<8x8x128xf32>, vector<8x8x128xf32>, vector<8x8x8xf32> -> vector<8x8x8xf32>
    "tpu.trace_stop"() : () -> ()
    %c0_23 = arith.constant 0 : index
    %c0_24 = arith.constant 0 : index
    %32 = vector.load %arg2[%c0_23, %c0_24] : memref<8x8xf32, #tpu.memory_space<vmem>>, vector<8x8xf32>
    %33 = vector.shape_cast %32 : vector<8x8xf32> to vector<8x1x8xf32>
    %34 = vector.broadcast %33 : vector<8x1x8xf32> to vector<8x8x8xf32>
    %35 = arith.addf %31, %34 : vector<8x8x8xf32>
    %cst_25 = arith.constant dense<0xFF800000> : vector<8x8xf32>
    %36 = vector.multi_reduction <maximumf>, %35, %cst_25 [2] : vector<8x8x8xf32> to vector<8x8xf32>
    %37 = vector.shape_cast %36 : vector<8x8xf32> to vector<8x8x1xf32>
    %38 = vector.broadcast %37 : vector<8x8x1xf32> to vector<8x8x8xf32>
    %39 = arith.subf %35, %38 : vector<8x8x8xf32>
    %40 = math.exp %39 : vector<8x8x8xf32>
    %cst_26 = arith.constant dense<0.000000e+00> : vector<8x8xf32>
    %41 = vector.multi_reduction <add>, %40, %cst_26 [2] : vector<8x8x8xf32> to vector<8x8xf32>
    %42 = vector.shape_cast %41 : vector<8x8xf32> to vector<8x8x1xf32>
    %43 = tpu.reciprocal %42 {approx = true} : vector<8x8x1xf32> -> vector<8x8x1xf32>
    %44 = vector.broadcast %43 : vector<8x8x1xf32> to vector<8x8x8xf32>
    %45 = arith.mulf %40, %44 : vector<8x8x8xf32>
    "tpu.trace_start"() <{level = 10 : i32, message = "bqk,bkd->bqd"}> : () -> ()
    %cst_27 = arith.constant dense<0.000000e+00> : vector<8x8x128xf32>
    %46 = tpu.matmul %45, %30, %cst_27 {dimension_numbers = #tpu.dot_dimension_numbers<[2], [1], [1], [2], [0, 0, 0, 1, 1, 2], [0], [0]>} : vector<8x8x8xf32>, vector<8x8x128xf32>, vector<8x8x128xf32> -> vector<8x8x128xf32>
    "tpu.trace_stop"() : () -> ()
    %47 = vector.shape_cast %46 : vector<8x8x128xf32> to vector<64x128xf32>
    %48 = arith.truncf %47 : vector<64x128xf32> to vector<64x128xbf16>
    %cst_28 = arith.constant dense<0.000000e+00> : vector<64x128xf32>
    %49 = tpu.matmul %48, %1, %cst_28 {dimension_numbers = #tpu.dot_dimension_numbers<[1], [0], [0], [1], [0, 0, 1, 1], [], []>} : vector<64x128xbf16>, vector<128x128xbf16>, vector<64x128xf32> -> vector<64x128xf32>
    %50 = vector.broadcast %6 : vector<1x128xf32> to vector<64x128xf32>
    %51 = arith.addf %49, %50 : vector<64x128xf32>
    %52 = arith.addf %21, %51 : vector<64x128xf32>
    %cst_29 = arith.constant dense<0.000000e+00> : vector<64xf32>
    %53 = vector.multi_reduction <add>, %52, %cst_29 [1] : vector<64x128xf32> to vector<64xf32>
    %54 = vector.shape_cast %53 : vector<64xf32> to vector<64x1xf32>
    %cst_30 = arith.constant 3.125000e-02 : f32
    %55 = vector.broadcast %cst_30 : f32 to vector<64x1xf32>
    %56 = arith.mulf %54, %55 : vector<64x1xf32>
    %57 = vector.broadcast %56 : vector<64x1xf32> to vector<64x128xf32>
    %58 = arith.subf %52, %57 : vector<64x128xf32>
    %59 = vector.broadcast %18 : vector<1x128xf32> to vector<64x128xf32>
    %60 = arith.mulf %58, %59 : vector<64x128xf32>
    %61 = arith.mulf %60, %60 : vector<64x128xf32>
    %cst_31 = arith.constant dense<0.000000e+00> : vector<64xf32>
    %62 = vector.multi_reduction <add>, %61, %cst_31 [1] : vector<64x128xf32> to vector<64xf32>
    %63 = vector.shape_cast %62 : vector<64xf32> to vector<64x1xf32>
    %cst_32 = arith.constant 3.125000e-02 : f32
    %64 = vector.broadcast %cst_32 : f32 to vector<64x1xf32>
    %65 = arith.mulf %63, %64 : vector<64x1xf32>
    %cst_33 = arith.constant 9.99999974E-6 : f32
    %66 = vector.broadcast %cst_33 : f32 to vector<64x1xf32>
    %67 = arith.addf %65, %66 : vector<64x1xf32>
    %68 = math.rsqrt %67 : vector<64x1xf32>
    %69 = vector.broadcast %68 : vector<64x1xf32> to vector<64x128xf32>
    %70 = arith.mulf %60, %69 : vector<64x128xf32>
    %71 = vector.broadcast %7 : vector<1x128xf32> to vector<64x128xf32>
    %72 = arith.mulf %70, %71 : vector<64x128xf32>
    %73 = vector.broadcast %8 : vector<1x128xf32> to vector<64x128xf32>
    %74 = arith.addf %72, %73 : vector<64x128xf32>
    %75 = arith.truncf %74 : vector<64x128xf32> to vector<64x128xbf16>
    %cst_34 = arith.constant dense<0.000000e+00> : vector<64x128xf32>
    %76 = tpu.matmul %75, %2, %cst_34 {dimension_numbers = #tpu.dot_dimension_numbers<[1], [0], [0], [1], [0, 0, 1, 1], [], []>} : vector<64x128xbf16>, vector<128x128xbf16>, vector<64x128xf32> -> vector<64x128xf32>
    %77 = vector.broadcast %9 : vector<1x128xf32> to vector<64x128xf32>
    %78 = arith.addf %76, %77 : vector<64x128xf32>
    %cst_35 = arith.constant 0.000000e+00 : f32
    %79 = vector.broadcast %cst_35 : f32 to vector<64x128xf32>
    %80 = arith.maximumf %78, %79 : vector<64x128xf32>
    %81 = arith.truncf %80 : vector<64x128xf32> to vector<64x128xbf16>
    %cst_36 = arith.constant dense<0.000000e+00> : vector<64x128xf32>
    %82 = tpu.matmul %81, %3, %cst_36 {dimension_numbers = #tpu.dot_dimension_numbers<[1], [0], [0], [1], [0, 0, 1, 1], [], []>} : vector<64x128xbf16>, vector<128x128xbf16>, vector<64x128xf32> -> vector<64x128xf32>
    %83 = vector.broadcast %10 : vector<1x128xf32> to vector<64x128xf32>
    %84 = arith.addf %82, %83 : vector<64x128xf32>
    %85 = arith.addf %74, %84 : vector<64x128xf32>
    %cst_37 = arith.constant dense<0.000000e+00> : vector<64xf32>
    %86 = vector.multi_reduction <add>, %85, %cst_37 [1] : vector<64x128xf32> to vector<64xf32>
    %87 = vector.shape_cast %86 : vector<64xf32> to vector<64x1xf32>
    %cst_38 = arith.constant 3.125000e-02 : f32
    %88 = vector.broadcast %cst_38 : f32 to vector<64x1xf32>
    %89 = arith.mulf %87, %88 : vector<64x1xf32>
    %90 = vector.broadcast %89 : vector<64x1xf32> to vector<64x128xf32>
    %91 = arith.subf %85, %90 : vector<64x128xf32>
    %92 = vector.broadcast %18 : vector<1x128xf32> to vector<64x128xf32>
    %93 = arith.mulf %91, %92 : vector<64x128xf32>
    %94 = arith.mulf %93, %93 : vector<64x128xf32>
    %cst_39 = arith.constant dense<0.000000e+00> : vector<64xf32>
    %95 = vector.multi_reduction <add>, %94, %cst_39 [1] : vector<64x128xf32> to vector<64xf32>
    %96 = vector.shape_cast %95 : vector<64xf32> to vector<64x1xf32>
    %cst_40 = arith.constant 3.125000e-02 : f32
    %97 = vector.broadcast %cst_40 : f32 to vector<64x1xf32>
    %98 = arith.mulf %96, %97 : vector<64x1xf32>
    %cst_41 = arith.constant 9.99999974E-6 : f32
    %99 = vector.broadcast %cst_41 : f32 to vector<64x1xf32>
    %100 = arith.addf %98, %99 : vector<64x1xf32>
    %101 = math.rsqrt %100 : vector<64x1xf32>
    %102 = vector.broadcast %101 : vector<64x1xf32> to vector<64x128xf32>
    %103 = arith.mulf %93, %102 : vector<64x128xf32>
    %104 = vector.broadcast %11 : vector<1x128xf32> to vector<64x128xf32>
    %105 = arith.mulf %103, %104 : vector<64x128xf32>
    %106 = vector.broadcast %12 : vector<1x128xf32> to vector<64x128xf32>
    %107 = arith.addf %105, %106 : vector<64x128xf32>
    %108 = vector.shape_cast %107 : vector<64x128xf32> to vector<8x8x128xf32>
    %c0_42 = arith.constant 0 : index
    %c0_43 = arith.constant 0 : index
    %c0_44 = arith.constant 0 : index
    %109 = vector.load %arg3[%c0_42, %c0_43, %c0_44] : memref<8x8x1xf32, #tpu.memory_space<vmem>>, vector<8x8x1xf32>
    %cst_45 = arith.constant 5.000000e-01 : f32
    %110 = vector.broadcast %cst_45 : f32 to vector<8x8x1xf32>
    %111 = arith.cmpf ogt, %109, %110 : vector<8x8x1xf32>
    %cst_46 = arith.constant 0.000000e+00 : f32
    %112 = vector.shape_cast %111 : vector<8x8x1xi1> to vector<8x8x1xi1>
    %113 = vector.broadcast %112 : vector<8x8x1xi1> to vector<8x8x128xi1>
    %114 = vector.broadcast %cst_46 : f32 to vector<8x8x128xf32>
    %115 = arith.select %113, %114, %108 : vector<8x8x128xi1>, vector<8x8x128xf32>
    %116 = vector.extract_strided_slice %115 {offsets = [0, 7, 0], sizes = [8, 1, 128], strides = [1, 1, 1]} : vector<8x8x128xf32> to vector<8x1x128xf32>
    %117 = vector.shape_cast %116 : vector<8x1x128xf32> to vector<8x128xf32>
    %cst_47 = arith.constant -1.000000e+09 : f32
    %118 = vector.shape_cast %111 : vector<8x8x1xi1> to vector<8x8x1xi1>
    %119 = vector.broadcast %118 : vector<8x8x1xi1> to vector<8x8x128xi1>
    %120 = vector.broadcast %cst_47 : f32 to vector<8x8x128xf32>
    %121 = arith.select %119, %120, %115 : vector<8x8x128xi1>, vector<8x8x128xf32>
    %cst_48 = arith.constant dense<0xFF800000> : vector<8x128xf32>
    %122 = vector.multi_reduction <maximumf>, %121, %cst_48 [1] : vector<8x8x128xf32> to vector<8x128xf32>
    %123 = arith.truncf %122 : vector<8x128xf32> to vector<8x128xbf16>
    %cst_49 = arith.constant dense<0.000000e+00> : vector<8x128xf32>
    %124 = tpu.matmul %123, %4, %cst_49 {dimension_numbers = #tpu.dot_dimension_numbers<[1], [0], [0], [1], [0, 0, 1, 1], [], []>} : vector<8x128xbf16>, vector<128x128xbf16>, vector<8x128xf32> -> vector<8x128xf32>
    %125 = vector.broadcast %13 : vector<1x128xf32> to vector<8x128xf32>
    %126 = arith.addf %124, %125 : vector<8x128xf32>
    %127 = tpu.concatenate %117, %126 in 1 : vector<8x128xf32>, vector<8x128xf32> -> vector<8x256xf32>
    %c0_50 = arith.constant 0 : index
    %c0_51 = arith.constant 0 : index
    %128 = vector.load %arg6[%c0_50, %c0_51] : memref<8x256xf32, #tpu.memory_space<vmem>>, vector<8x256xf32>
    tpu.vector_store %arg6[%c0_50, %c0_51], %127 {strides = array<i32>} : memref<8x256xf32, #tpu.memory_space<vmem>>, vector<8x256xf32>,
    return
  }
  func.func @transform_0(%arg0: i32) -> (i32, i32, i32) {
    %c0_i32 = arith.constant 0 : i32
    %c0_i32_0 = arith.constant 0 : i32
    %c0_i32_1 = arith.constant 0 : i32
    return %arg0, %c0_i32, %c0_i32_0 : i32, i32, i32
  }
  func.func @transform_1(%arg0: i32) -> (i32, i32) {
    %c0_i32 = arith.constant 0 : i32
    %c0_i32_0 = arith.constant 0 : i32
    return %arg0, %c0_i32 : i32, i32
  }
  func.func @transform_2(%arg0: i32) -> (i32, i32, i32) {
    %c0_i32 = arith.constant 0 : i32
    %c0_i32_0 = arith.constant 0 : i32
    %c0_i32_1 = arith.constant 0 : i32
    return %arg0, %c0_i32, %c0_i32_0 : i32, i32, i32
  }
  func.func @transform_3(%arg0: i32) -> (i32, i32) {
    %c0_i32 = arith.constant 0 : i32
    %c0_i32_0 = arith.constant 0 : i32
    %c0_i32_1 = arith.constant 0 : i32
    return %c0_i32, %c0_i32_0 : i32, i32
  }
  func.func @transform_4(%arg0: i32) -> (i32, i32) {
    %c0_i32 = arith.constant 0 : i32
    %c0_i32_0 = arith.constant 0 : i32
    %c0_i32_1 = arith.constant 0 : i32
    return %c0_i32, %c0_i32_0 : i32, i32
  }
  func.func @transform_5(%arg0: i32) -> (i32, i32) {
    %c0_i32 = arith.constant 0 : i32
    %c0_i32_0 = arith.constant 0 : i32
    return %arg0, %c0_i32 : i32, i32
  }
}

</mosaic_0001>

<bundles_post_ra>
// kernel: transact_forward.1
= control target key start
LH: loop header
LB: loop body
LE: loop exit
PB: predicated region body
PF: predicated region fallthrough
CT: control target
= control target key end

     0   :  { %s2546_s18 = smov 0   ;;  %s3412_s0 = inlined_call_operand.vmem [shape: bf16[16,8,128], index: 0, kind: input, shape index: {}]   ;;  %s3413_s1 = inlined_call_operand.vmem [shape: f32[16,8], index: 1, kind: input, shape index: {}]   ;;  %s3414_s2 = inlined_call_operand.vmem [shape: f32[16,8,1], index: 2, kind: input, shape index: {}]   ;;  %s3415_s3 = inlined_call_operand.vmem [shape: bf16[128,896], index: 3, kind: input, shape index: {}]   ;;  %s3416_s4 = inlined_call_operand.vmem [shape: f32[1,1408], index: 4, kind: input, shape index: {}]   ;;  %s3417_s5 = inlined_call_operand.vmem [shape: f32[16,256], index: 5, kind: output, shape index: {}]  }
   0x1 LB: > { %s2552_s19 = sadd.s32 4294967295, %s2512_s18   ;;  %p2092_p0 = scmp.ge.s32.totalorder %s2512_s18, 1  ;;  %s2512_s18 = sphi %s2546_s18, %s15_s18  }
   0x2   : > { %p208_p1 = scmp.lt.s32.totalorder %s2512_s18, 3 }
   0x4   : > { %p209_p2 = pnand %p2092_p0, %p208_p1 }
   0x5   : > { %s2093_s12 = sshll.u32 (!%p209_p2), %s2552_s19, 3  ;;  %p251_p4 = scmp.lt.s32.totalorder (!%p209_p2), %s2552_s19, 1 }
   0x6   : > { %212 = sbr.rel (%p209_p2) target bundleno = 1875 (0x753), region = 40  ;;  %p246_p3 = scmp.lt.s32.totalorder (!%p209_p2), %s2093_s12, 15 }
   0xb   : > { %v2203_v0 = vld [vmem:[%s3415_s3 + $0x188] sm:$0xf]  ;;  %v2375_v1 = vld [vmem:[%s3415_s3 + $0x1a0] sm:$0xf0]  ;;  %v2374_v2 = vld [vmem:[%s3415_s3 + $0x18c] sm:$0xf] }
   0xc   : > { %v2204_v3 = vor.u32 %v2375_v1, %v2203_v0  ;;  %v2205_v4 = vld [vmem:[%s3415_s3 + $0x1a4] sm:$0xf0]  ;;  %v2191_v5 = vld [vmem:[%s3415_s3 + $0x150] sm:$0xf]  ;;  %v2372_v6 = vld [vmem:[%s3415_s3 + $0x168] sm:$0xf0] }
   0xd   : > { %v2208_v7 = vor.u32 %v2374_v2, %v2205_v4  ;;  %v2371_v8 = vld [vmem:[%s3415_s3 + $0x154] sm:$0xf]  ;;  %v2193_v9 = vld [vmem:[%s3415_s3 + $0x16c] sm:$0xf0]  ;;  %v2192_v10 = vor.u32 %v2372_v6, %v2191_v5  ;;  %v2179_v12 = vld [vmem:[%s3415_s3 + $0x118] sm:$0xf] }
   0xe   : > { %551 = vmatpush.bf16.msra.mxu0 %v2204_v3  ;;  %v2196_v11 = vor.u32 %v2371_v8, %v2193_v9  ;;  %v2369_v13 = vld [vmem:[%s3415_s3 + $0x130] sm:$0xf0]  ;;  %v2368_v14 = vld [vmem:[%s3415_s3 + $0x11c] sm:$0xf]  ;;  %v2181_v15 = vld [vmem:[%s3415_s3 + $0x134] sm:$0xf0] }
   0xf   : > { %580 = vmatpush.bf16.msra.mxu1 %v2208_v7  ;;  %v2180_v16 = vor.u32 %v2369_v13, %v2179_v12  ;;  %v2184_v17 = vor.u32 %v2368_v14, %v2181_v15  ;;  %v2167_v18 = vld [vmem:[%s3415_s3 + $0xe0] sm:$0xf]  ;;  %v2366_v19 = vld [vmem:[%s3415_s3 + $0xf8] sm:$0xf0]  ;;  %v2365_v20 = vld [vmem:[%s3415_s3 + $0xe4] sm:$0xf] }
  0x10   : > { %v2169_v21 = vld [vmem:[%s3415_s3 + $0xfc] sm:$0xf0]  ;;  %v2155_v22 = vld [vmem:[%s3415_s3 + $0xa8] sm:$0xf]  ;;  %v2363_v23 = vld [vmem:[%s3415_s3 + $0xc0] sm:$0xf0]  ;;  %v2168_v24 = vor.u32 %v2366_v19, %v2167_v18 }
  0x11   : > { %v2362_v25 = vld [vmem:[%s3415_s3 + $0xac] sm:$0xf]  ;;  %v2157_v26 = vld [vmem:[%s3415_s3 + $0xc4] sm:$0xf0]  ;;  %v2172_v27 = vor.u32 %v2365_v20, %v2169_v21  ;;  %v2156_v28 = vor.u32 %v2363_v23, %v2155_v22  ;;  %v2143_v30 = vld [vmem:[%s3415_s3 + $0x70] sm:$0xf] }
  0x12   : > { %552 = vmatpush.bf16.msra.mxu0 %v2192_v10  ;;  %v2160_v29 = vor.u32 %v2362_v25, %v2157_v26  ;;  %v2360_v31 = vld [vmem:[%s3415_s3 + $0x88] sm:$0xf0]  ;;  %v2359_v32 = vld [vmem:[%s3415_s3 + $0x74] sm:$0xf]  ;;  %v2145_v33 = vld [vmem:[%s3415_s3 + $0x8c] sm:$0xf0] }
  0x13   : > { %581 = vmatpush.bf16.msra.mxu1 %v2196_v11  ;;  %v2144_v34 = vor.u32 %v2360_v31, %v2143_v30  ;;  %v2148_v35 = vor.u32 %v2359_v32, %v2145_v33  ;;  %v2131_v36 = vld [vmem:[%s3415_s3 + $0x38] sm:$0xf]  ;;  %v2357_v37 = vld [vmem:[%s3415_s3 + $0x50] sm:$0xf0]  ;;  %s3421_s12 = smov (!%p246_p3, %s2093_s12), 15  ;;  %s3423_s19 = smov (!%p251_p4, %s2552_s19), 1 }
  0x14   : > { %v2356_v38 = vld [vmem:[%s3415_s3 + $0x3c] sm:$0xf]  ;;  %v2133_v39 = vld [vmem:[%s3415_s3 + $0x54] sm:$0xf0]  ;;  %v2132_v40 = vor.u32 %v2357_v37, %v2131_v36  ;;  %v2119_v42 = vld [vmem:[%s3415_s3] sm:$0xf] }
  0x15   : > { %v2136_v41 = vor.u32 %v2356_v38, %v2133_v39  ;;  %v2354_v43 = vld [vmem:[%s3415_s3 + $0x18] sm:$0xf0]  ;;  %s2094_s10 = sshll.u32 %s3421_s12, 2  ;;  %v2353_v44 = vld [vmem:[%s3415_s3 + $0x4] sm:$0xf]  ;;  %s2095_s23 = sshll.u32 %s3423_s19, 3 }
  0x16   : > { %553 = vmatpush.bf16.msra.mxu0 %v2180_v16  ;;  %v2121_v45 = vld [vmem:[%s3415_s3 + $0x1c] sm:$0xf0]  ;;  %v2120_v46 = vor.u32 %v2354_v43, %v2119_v42  ;;  %s2659_s20 = scalar_lea.vmem %s3412_s0, %s2094_s10  ;;  %s254_s26 = scalar_lea.vmem %s3413_s1, %s2095_s23  ;;  %vm823_vm0 = vcmask 64512   ;;  %v2199_v32 = vld [vmem:[%s3415_s3 + $0x158] sm:$0xf] }
  0x17   : > { %582 = vmatpush.bf16.msra.mxu1 %v2184_v17  ;;  %v2124_v47 = vor.u32 %v2353_v44, %v2121_v45  ;;  %v2662_v48 = vld [vmem:[%s2659_s20] sm:$0xff]  ;;  %v2667_v49 = vld [vmem:[%s2659_s20 + $0x8] sm:$0xff]  ;;  %v2672_v50 = vld [vmem:[%s2659_s20 + $0x10] sm:$0xff]  ;;  %s2097_s10 = sshll.u32 %s3421_s12, 3 }
  0x18   : > { %v2677_v51 = vld [vmem:[%s2659_s20 + $0x18] sm:$0xff]  ;;  %v2684_v52 = vld [vmem:[%s3416_s4] sm:$0x7]  ;;  %v2373_v33 = vld [vmem:[%s3415_s3 + $0x170] sm:$0xf0]  ;;  %s3141_s14 = scalar_lea.vmem %s3414_s2, %s2097_s10 }
  0x19   : > { %v394_v53 = vperm.slane %v2684_v52, 1  ;;  %v393_v54 = vperm.slane %v2684_v52, 0  ;;  %v2696_v23 = vld [vmem:[%s254_s26] sm:$0xff]  ;;  %v2175_v43 = vld [vmem:[%s3415_s3 + $0xe8] sm:$0xf] }
  0x1a   : > { %554 = vmatpush.bf16.msra.mxu0 %v2168_v24  ;;  %v647_v24 = vperm.slane %v2696_v23, 0  ;;  %v641_v38 = vrot.slane %v2696_v23, 2  ;;  %v2187_v39 = vld [vmem:[%s3415_s3 + $0x120] sm:$0xf]  ;;  %v2367_v44 = vld [vmem:[%s3415_s3 + $0x100] sm:$0xf0] }
  0x1b   : > { %583 = vmatpush.bf16.msra.mxu1 %v2172_v27  ;;  %v640_v27 = vrot.slane %v2696_v23, 1 }
  0x1c   : > { %v649_v45 = vperm.slane %v641_v38, 0 }
  0x1e   : > { %555 = vmatpush.bf16.msra.mxu0 %v2156_v28  ;;  %v2211_v28 = vld [vmem:[%s3415_s3 + $0x190] sm:$0xf] }
  0x1f   : > { %584 = vmatpush.bf16.msra.mxu1 %v2160_v29  ;;  %v2376_v29 = vld [vmem:[%s3415_s3 + $0x1a8] sm:$0xf0] }
  0x20   : > { %v2212_v30 = vor.u32 %v2376_v29, %v2211_v28 }
  0x22   : > { %556 = vmatpush.bf16.msra.mxu0 %v2144_v34  ;;  %609 = vmatpush.bf16.msra.mxu2 %v2212_v30  ;;  %v648_v34 = vperm.slane %v640_v27, 0 }
  0x23   : > { %585 = vmatpush.bf16.msra.mxu1 %v2148_v35  ;;  %v2200_v35 = vor.u32 %v2373_v33, %v2199_v32 }
  0x26   : > { %557 = vmatpush.bf16.msra.mxu0 %v2132_v40  ;;  %610 = vmatpush.bf16.msra.mxu2 %v2200_v35  ;;  %v2370_v40 = vld [vmem:[%s3415_s3 + $0x138] sm:$0xf0] }
  0x27   : > { %586 = vmatpush.bf16.msra.mxu1 %v2136_v41  ;;  %v2188_v41 = vor.u32 %v2370_v40, %v2187_v39 }
  0x2a   : > { %558 = vmatpush.bf16.msra.mxu0 %v2120_v46  ;;  %611 = vmatpush.bf16.msra.mxu2 %v2188_v41  ;;  %v2176_v46 = vor.u32 %v2367_v44, %v2175_v43 }
  0x2b   : > { %587 = vmatpush.bf16.msra.mxu1 %v2124_v47 }
  0x2d   : > { %559 = vmatmul.bf16.vlgmr.msra.gmra.mxu0 %v2662_v48 }
  0x2e   : > { %588 = vmatmul.bf16.vlgmr.msra.gmra.mxu1 %v2662_v48  ;;  %612 = vmatpush.bf16.msra.mxu2 %v2176_v46 }
  0x3d   : > { %564 = vmatmul.bf16.gmra.mxu0 %v2667_v49 }
  0x3e   : > { %593 = vmatmul.bf16.gmra.mxu1 %v2667_v49 }
  0x4d   : > { %569 = vmatmul.bf16.gmra.mxu0 %v2672_v50 }
  0x4e   : > { %598 = vmatmul.bf16.gmra.mxu1 %v2672_v50 }
  0x5d   : > { %574 = vmatmul.bf16.gmra.mxu0 %v2677_v51 }
  0x5e   : > { %603 = vmatmul.bf16.gmra.mxu1 %v2677_v51 }
  0xaa   : > { %v560_v55 = vpop.f32.mrf.mxu0 }
  0xab   : > { %v589_v56 = vpop.f32.mrf.mxu1  ;;  %v561_v58 = vadd.f32 %v560_v55, %v393_v54  ;;  %v2163_v55 = vld [vmem:[%s3415_s3 + $0xb0] sm:$0xf] }
  0xac   : > { %v590_v57 = vadd.f32 %v589_v56, %v394_v53  ;;  %v2364_v56 = vld [vmem:[%s3415_s3 + $0xc8] sm:$0xf0] }
  0xae   : > { %678 = vmatpush.xpose.msra.mxu3 %v590_v57  ;;  %v2164_v57 = vor.u32 %v2364_v56, %v2163_v55 }
  0xb0   : > { %613 = vmatpush.bf16.msra.mxu2 %v2164_v57  ;;  %v2799_v57 = vperm.slane %v2684_v52, 2 }
  0xb1   : > { %679 = vmatmul.f32.vlgmr.msra.gmra.mxu3 %v561_v58 }
  0xb2   : > { %v562_v59 = vpop.f32.mrf.mxu0 }
  0xb3   : > { %v591_v60 = vpop.f32.mrf.mxu1  ;;  %v563_v62 = vadd.f32 %v562_v59, %v393_v54  ;;  %v2151_v59 = vld [vmem:[%s3415_s3 + $0x78] sm:$0xf] }
  0xb4   : > { %v592_v61 = vadd.f32 %v591_v60, %v394_v53  ;;  %v2361_v60 = vld [vmem:[%s3415_s3 + $0x90] sm:$0xf0] }
  0xb6   : > { %698 = vmatpush.xpose.msrb.mxu3 %v592_v61 }
  0xb9   : > { %699 = vmatmul.f32.vlgmr.msrb.gmra.mxu3 %v563_v62  ;;  %v2152_v62 = vor.u32 %v2361_v60, %v2151_v59 }
  0xba   : > { %v565_v63 = vpop.f32.mrf.mxu0 }
  0xbb   : > { %v594_v0 = vpop.f32.mrf.mxu1  ;;  %v566_v2 = vadd.f32 %v565_v63, %v393_v54  ;;  %614 = vmatpush.bf16.msra.mxu2 %v2152_v62 }
  0xbc   : > { %v595_v1 = vadd.f32 %v594_v0, %v394_v53 }
  0xbe   : > { %718 = vmatpush.xpose.msra.mxu3 %v595_v1  ;;  %v643_v1 = vrot.slane %v2696_v23, 4 }
  0xc1   : > { %719 = vmatmul.f32.vlgmr.msra.gmra.mxu3 %v566_v2  ;;  %v2139_v2 = vld [vmem:[%s3415_s3 + $0x40] sm:$0xf] }
  0xc2   : > { %v567_v3 = vpop.f32.mrf.mxu0 }
  0xc3   : > { %v596_v4 = vpop.f32.mrf.mxu1  ;;  %v568_v6 = vadd.f32 %v567_v3, %v393_v54  ;;  %v2358_v3 = vld [vmem:[%s3415_s3 + $0x58] sm:$0xf0] }
  0xc4   : > { %v597_v5 = vadd.f32 %v596_v4, %v394_v53  ;;  %v2140_v4 = vor.u32 %v2358_v3, %v2139_v2 }
  0xc6   : > { %738 = vmatpush.xpose.msrb.mxu3 %v597_v5  ;;  %615 = vmatpush.bf16.msra.mxu2 %v2140_v4 }
  0xc9   : > { %739 = vmatmul.f32.vlgmr.msrb.gmra.mxu3 %v568_v6  ;;  %v2127_v6 = vld [vmem:[%s3415_s3 + $0x8] sm:$0xf] }
  0xca   : > { %v570_v7 = vpop.f32.mrf.mxu0 }
  0xcb   : > { %v599_v8 = vpop.f32.mrf.mxu1  ;;  %v571_v10 = vadd.f32 %v570_v7, %v393_v54  ;;  %v2355_v7 = vld [vmem:[%s3415_s3 + $0x20] sm:$0xf0] }
  0xcc   : > { %v600_v9 = vadd.f32 %v599_v8, %v394_v53  ;;  %v651_v8 = vperm.slane %v643_v1, 0 }
  0xce   : > { %758 = vmatpush.xpose.msra.mxu3 %v600_v9  ;;  %v2128_v9 = vor.u32 %v2355_v7, %v2127_v6 }
  0xd0   : > { %616 = vmatpush.bf16.msra.mxu2 %v2128_v9 }
  0xd1   : > { %759 = vmatmul.f32.vlgmr.msra.gmra.mxu3 %v571_v10 }
  0xd2   : > { %v572_v11 = vpop.f32.mrf.mxu0 }
  0xd3   : > { %v601_v12 = vpop.f32.mrf.mxu1  ;;  %v573_v14 = vadd.f32 %v572_v11, %v393_v54  ;;  %617 = vmatmul.bf16.vlgmr.msra.gmra.mxu2 %v2662_v48 }
  0xd4   : > { %v602_v13 = vadd.f32 %v601_v12, %v394_v53  ;;  %v644_v12 = vrot.slane %v2696_v23, 5 }
  0xd6   : > { %778 = vmatpush.xpose.msrb.mxu3 %v602_v13 }
  0xd9   : > { %779 = vmatmul.f32.vlgmr.msrb.gmra.mxu3 %v573_v14  ;;  %v652_v14 = vperm.slane %v644_v12, 0 }
  0xda   : > { %v575_v15 = vpop.f32.mrf.mxu0 }
  0xdb   : > { %v604_v16 = vpop.f32.mrf.mxu1  ;;  %v576_v18 = vadd.f32 %v575_v15, %v393_v54 }
  0xdc   : > { %v605_v17 = vadd.f32 %v604_v16, %v394_v53 }
  0xde   : > { %798 = vmatpush.xpose.msra.mxu3 %v605_v17  ;;  %v645_v17 = vrot.slane %v2696_v23, 6 }
  0xe1   : > { %799 = vmatmul.f32.vlgmr.msra.gmra.mxu3 %v576_v18 }
  0xe2   : > { %v577_v20 = vpop.f32.mrf.mxu0 }
  0xe3   : > { %v606_v19 = vpop.f32.mrf.mxu1  ;;  %v578_v22 = vadd.f32 %v577_v20, %v393_v54  ;;  %v642_v54 = vrot.slane %v2696_v23, 3  ;;  %622 = vmatmul.bf16.gmra.mxu2 %v2667_v49 }
  0xe4   : > { %v607_v21 = vadd.f32 %v606_v19, %v394_v53  ;;  %v653_v19 = vperm.slane %v645_v17, 0 }
  0xe5   : > { %v650_v61 = vperm.slane %v642_v54, 0 }
  0xe6   : > { %818 = vmatpush.xpose.msrb.mxu3 %v607_v21 }
  0xe9   : > { %819 = vmatmul.f32.vlgmr.msrb.gmra.mxu3 %v578_v22  ;;  %v646_v22 = vrot.slane %v2696_v23, 7 }
  0xeb   : > { %v654_v48 = vperm.slane %v646_v22, 0 }
  0xf3   : > { %627 = vmatmul.bf16.gmra.mxu2 %v2672_v50 }
 0x103   : > { %632 = vmatmul.bf16.gmra.mxu2 %v2677_v51 }
 0x134   : > { %v680_v25 = vpop.f32.mrf.mxu3 }
 0x135   : > { %v2699_v26 = vadd.f32 %v680_v25, %v647_v24 }
 0x137   : > { %v824_v31 = vsel %vm823_vm0, %v2699_v26, -inf }
 0x138   : > { %825 = vmax.xlane.f32.xlu0 %v824_v31 }
 0x13c   : > { %v700_v36 = vpop.f32.mrf.mxu3 }
 0x13d   : > { %v2716_v37 = vadd.f32 %v700_v36, %v648_v34 }
 0x13f   : > { %v827_v42 = vsel %vm823_vm0, %v2716_v37, -inf }
 0x140   : > { %828 = vmax.xlane.f32.xlu0 %v827_v42 }
 0x144   : > { %v720_v47 = vpop.f32.mrf.mxu3 }
 0x145   : > { %v2733_v53 = vadd.f32 %v720_v47, %v649_v45 }
 0x147   : > { %v830_v58 = vsel %vm823_vm0, %v2733_v53, -inf }
 0x148   : > { %831 = vmax.xlane.f32.xlu1 %v830_v58 }
 0x14c   : > { %v740_v63 = vpop.f32.mrf.mxu3 }
 0x14d   : > { %v741_v0 = vadd.f32 %v740_v63, %v650_v61 }
 0x14f   : > { %v833_v5 = vsel %vm823_vm0, %v741_v0, -inf }
 0x150   : > { %834 = vmax.xlane.f32.xlu1 %v833_v5 }
 0x154   : > { %v760_v10 = vpop.f32.mrf.mxu3 }
 0x155   : > { %v761_v11 = vadd.f32 %v760_v10, %v651_v8 }
 0x156   : > { %v618_v58 = vpop.f32.mrf.mxu2 }
 0x157   : > { %v836_v13 = vsel %vm823_vm0, %v761_v11, -inf  ;;  %v619_v60 = vadd.f32 %v618_v58, %v2799_v57 }
 0x158   : > { %837 = vmax.xlane.f32.xlu2 %v836_v13 }
 0x159   : > { %930 = vmatpush.msra.mxu3 %v619_v60 }
 0x15c   : > { %v780_v15 = vpop.f32.mrf.mxu3 }
 0x15d   : > { %v781_v16 = vadd.f32 %v780_v15, %v652_v14 }
 0x15e   : > { %v620_v1 = vpop.f32.mrf.mxu2 }
 0x15f   : > { %v839_v18 = vsel %vm823_vm0, %v781_v16, -inf  ;;  %v621_v52 = vadd.f32 %v620_v1, %v2799_v57  ;;  %v2378_v1 = vld [vmem:[%s3415_s3 + $0x5c] sm:$0xf0] }
 0x160   : > { %840 = vmax.xlane.f32.xlu2 %v839_v18 }
 0x161   : > { %953 = vmatpush.msrb.mxu3 %v621_v52  ;;  %v2223_v52 = vld [vmem:[%s3415_s3 + $0xc] sm:$0xf] }
 0x164   : > { %v800_v20 = vpop.f32.mrf.mxu3 }
 0x165   : > { %v801_v21 = vadd.f32 %v800_v20, %v653_v19 }
 0x166   : > { %v623_v7 = vpop.f32.mrf.mxu2 }
 0x167   : > { %v842_v24 = vsel %vm823_vm0, %v801_v21, -inf  ;;  %v624_v8 = vadd.f32 %v623_v7, %v2799_v57 }
 0x168   : > { %843 = vmax.xlane.f32.xlu1 %v842_v24 }
 0x16c   : > { %v820_v25 = vpop.f32.mrf.mxu3 }
 0x16d   : > { %v821_v27 = vadd.f32 %v820_v25, %v654_v48 }
 0x16f   : > { %v845_v28 = vsel %vm823_vm0, %v821_v27, -inf }
 0x170   : > { %846 = vmax.xlane.f32.xlu2 %v845_v28 }
 0x1ab   : > { %v826_v29 = vpop.xlane.xlu0 %825 }
 0x1ac   : > { %v848_v30 = vsub.f32 %v2699_v26, %v826_v29 }
 0x1ae   : > { %v856_v31 = vmul.f32 1.442695, %v848_v30 }
 0x1b0   : > { %2442 = vpow2.f32 %v856_v31 }
 0x1b3   : > { %v829_v23 = vpop.xlane.xlu0 %828 }
 0x1b4   : > { %v849_v32 = vsub.f32 %v2716_v37, %v829_v23 }
 0x1b6   : > { %v2777_v49 = vpop.eup %2442  ;;  %v858_v33 = vmul.f32 1.442695, %v849_v32  ;;  %v2251_v32 = vld [vmem:[%s3415_s3 + $0x194] sm:$0xf] }
 0x1b7   : > { %v872_v34 = vsel %vm823_vm0, %v2777_v49, 0.0 }
 0x1b8   : > { %2444 = vpow2.f32 %v858_v33  ;;  %873 = vadd.xlane.f32.xlu0 %v872_v34  ;;  %v2247_v33 = vld [vmem:[%s3415_s3 + $0x15c] sm:$0xf] }
 0x1bb   : > { %v832_v35 = vpop.xlane.xlu1 %831 }
 0x1bc   : > { %v850_v50 = vsub.f32 %v2733_v53, %v832_v35  ;;  %v2383_v35 = vld [vmem:[%s3415_s3 + $0x174] sm:$0xf0] }
 0x1be   : > { %v2782_v51 = vpop.eup %2444  ;;  %v860_v36 = vmul.f32 1.442695, %v850_v50 }
 0x1bf   : > { %v875_v26 = vsel %vm823_vm0, %v2782_v51, 0.0 }
 0x1c0   : > { %2446 = vpow2.f32 %v860_v36  ;;  %876 = vadd.xlane.f32.xlu0 %v875_v26  ;;  %v2243_v36 = vld [vmem:[%s3415_s3 + $0x124] sm:$0xf]  ;;  %v2382_v26 = vld [vmem:[%s3415_s3 + $0x13c] sm:$0xf0] }
 0x1c3   : > { %v835_v37 = vpop.xlane.xlu1 %834 }
 0x1c4   : > { %v851_v38 = vsub.f32 %v741_v0, %v835_v37 }
 0x1c6   : > { %v2786_v39 = vpop.eup %2446  ;;  %v862_v40 = vmul.f32 1.442695, %v851_v38 }
 0x1c7   : > { %v878_v41 = vsel %vm823_vm0, %v2786_v39, 0.0 }
 0x1c8   : > { %2448 = vpow2.f32 %v862_v40  ;;  %879 = vadd.xlane.f32.xlu1 %v878_v41  ;;  %v2244_v41 = vor.u32 %v2382_v26, %v2243_v36 }
 0x1cb   : > { %v838_v42 = vpop.xlane.xlu2 %837 }
 0x1cc   : > { %v852_v43 = vsub.f32 %v761_v11, %v838_v42  ;;  %v625_v11 = vpop.f32.mrf.mxu2  ;;  %v2239_v42 = vld [vmem:[%s3415_s3 + $0xec] sm:$0xf] }
 0x1cd   : > { %v626_v12 = vadd.f32 %v625_v11, %v2799_v57 }
 0x1ce   : > { %v2790_v44 = vpop.eup %2448  ;;  %v864_v45 = vmul.f32 1.442695, %v852_v43  ;;  %v2381_v43 = vld [vmem:[%s3415_s3 + $0x104] sm:$0xf0] }
 0x1cf   : > { %v881_v46 = vsel %vm823_vm0, %v2790_v44, 0.0 }
 0x1d0   : > { %2450 = vpow2.f32 %v864_v45  ;;  %882 = vadd.xlane.f32.xlu2 %v881_v46  ;;  %v2235_v45 = vld [vmem:[%s3415_s3 + $0xb4] sm:$0xf]  ;;  %v2380_v46 = vld [vmem:[%s3415_s3 + $0xcc] sm:$0xf0] }
 0x1d3   : > { %v841_v47 = vpop.xlane.xlu2 %840 }
 0x1d4   : > { %v853_v53 = vsub.f32 %v781_v16, %v841_v47  ;;  %v628_v13 = vpop.f32.mrf.mxu2 }
 0x1d5   : > { %v629_v14 = vadd.f32 %v628_v13, %v2799_v57 }
 0x1d6   : > { %v2794_v54 = vpop.eup %2450  ;;  %v866_v55 = vmul.f32 1.442695, %v853_v53 }
 0x1d7   : > { %v884_v56 = vsel %vm823_vm0, %v2794_v54, 0.0 }
 0x1d8   : > { %2452 = vpow2.f32 %v866_v55  ;;  %885 = vadd.xlane.f32.xlu0 %v884_v56  ;;  %v2236_v55 = vor.u32 %v2380_v46, %v2235_v45  ;;  %v2231_v56 = vld [vmem:[%s3415_s3 + $0x7c] sm:$0xf] }
 0x1db   : > { %v844_v59 = vpop.xlane.xlu1 %843 }
 0x1dc   : > { %v854_v61 = vsub.f32 %v801_v21, %v844_v59  ;;  %v630_v15 = vpop.f32.mrf.mxu2 }
 0x1dd   : > { %v631_v16 = vadd.f32 %v630_v15, %v2799_v57 }
 0x1de   : > { %v2802_v62 = vpop.eup %2452  ;;  %v868_v63 = vmul.f32 1.442695, %v854_v61 }
 0x1df   : > { %v887_v0 = vsel %vm823_vm0, %v2802_v62, 0.0 }
 0x1e0   : > { %2454 = vpow2.f32 %v868_v63  ;;  %888 = vadd.xlane.f32.xlu1 %v887_v0  ;;  %v2227_v0 = vld [vmem:[%s3415_s3 + $0x44] sm:$0xf] }
 0x1e3   : > { %v847_v2 = vpop.xlane.xlu2 %846 }
 0x1e4   : > { %v855_v3 = vsub.f32 %v821_v27, %v847_v2  ;;  %v633_v17 = vpop.f32.mrf.mxu2  ;;  %v2228_v2 = vor.u32 %v2378_v1, %v2227_v0 }
 0x1e5   : > { %v634_v18 = vadd.f32 %v633_v17, %v2799_v57  ;;  %v376_v17 = vld [vmem:[%s2659_s20] sm:$0xff]  }
 0x1e6   : > { %v2807_v4 = vpop.eup %2454  ;;  %v870_v5 = vmul.f32 1.442695, %v855_v3  ;;  %v2377_v3 = vld [vmem:[%s3415_s3 + $0x24] sm:$0xf0] }
 0x1e7   : > { %v890_v6 = vsel %vm823_vm0, %v2807_v4, 0.0  ;;  %1068 = vmatpush.msrb.mxu2 %v634_v18  ;;  %v2434_v18 = vld [vmem:[%s3416_s4 + $0x3] ss:$0 sm:$0xff] }
 0x1e8   : > { %2456 = vpow2.f32 %v870_v5  ;;  %891 = vadd.xlane.f32.xlu2 %v890_v6 }
 0x1ec   : > { %v635_v50 = vpop.f32.mrf.mxu2 }
 0x1ed   : > { %v636_v38 = vadd.f32 %v635_v50, %v2799_v57  ;;  %v2379_v57 = vld [vmem:[%s3415_s3 + $0x94] sm:$0xf0] }
 0x1ee   : > { %v2812_v9 = vpop.eup %2456  ;;  %v2232_v58 = vor.u32 %v2379_v57, %v2231_v56 }
 0x1ef   : > { %v893_v10 = vsel %vm823_vm0, %v2812_v9, 0.0 }
 0x1f0   : > { %894 = vadd.xlane.f32.xlu0 %v893_v10 }
 0x22b   : > { %v874_v19 = vpop.xlane.xlu0 %873 }
 0x22c   : > { %2458 = vrcp.f32 %v874_v19  ;;  %v384_v19 = vunpack.c.l.bf16 %v376_v17 }
 0x232   : > { %v2459_v20 = vpop.eup %2458 }
 0x233   : > { %v904_v21 = vmul.f32 %v2459_v20, %v2777_v49  ;;  %v877_v22 = vpop.xlane.xlu0 %876  ;;  %v2384_v49 = vld [vmem:[%s3415_s3 + $0x1ac] sm:$0xf0] }
 0x234   : > { %2460 = vrcp.f32 %v877_v22  ;;  %v2252_v34 = vor.u32 %v2384_v49, %v2251_v32 }
 0x235   : > { %2213 = vmatmul.msk.f32.vlgmr.msra.gmra.mxu3 %vm823_vm0, %v904_v21 }
 0x236   : > { %976 = vmatpush.msra.mxu3 %v624_v8  ;;  %1151 = vmatpush.bf16.msrb.mxu0 %v2252_v34 }
 0x23a   : > { %v2461_v24 = vpop.eup %2460 }
 0x23b   : > { %v905_v48 = vmul.f32 %v2461_v24, %v2782_v51  ;;  %v880_v25 = vpop.xlane.xlu1 %879  ;;  %v2248_v51 = vor.u32 %v2383_v35, %v2247_v33  ;;  %v385_v24 = vunpack.c.h.bf16 %v376_v17  ;;  %v380_v35 = vld [vmem:[%s2659_s20 + $0x10] sm:$0xff]  }
 0x23c   : > { %2462 = vrcp.f32 %v880_v25  ;;  %v388_v50 = vunpack.c.l.bf16 %v380_v35  ;;  %v2392_v17 = vld [vmem:[%s3415_s3 + $0x1b0] sm:$0xf0] }
 0x23d   : > { %2214 = vmatmul.msk.f32.vlgmr.msrb.gmra.mxu3 %vm823_vm0, %v905_v48  ;;  %1152 = vmatpush.bf16.msrb.mxu0 %v2248_v51 }
 0x23e   : > { %999 = vmatpush.msrb.mxu3 %v626_v12 }
 0x241   : > { %1153 = vmatpush.bf16.msrb.mxu0 %v2244_v41  ;;  %v382_v41 = vld [vmem:[%s2659_s20 + $0x18] sm:$0xff]  }
 0x242   : > { %v2463_v27 = vpop.eup %2462  ;;  %v391_v46 = vunpack.c.h.bf16 %v382_v41 }
 0x243   : > { %v906_v28 = vmul.f32 %v2463_v27, %v2786_v39  ;;  %v883_v29 = vpop.xlane.xlu2 %882 }
 0x244   : > { %2464 = vrcp.f32 %v883_v29 }
 0x245   : > { %2215 = vmatmul.msk.f32.vlgmr.msra.gmra.mxu3 %vm823_vm0, %v906_v28  ;;  %v378_v28 = vld [vmem:[%s2659_s20 + $0x8] sm:$0xff]   ;;  %s2352_s20 = sshll.u32 %s3423_s19, 4 }
 0x246   : > { %1022 = vmatpush.msra.mxu3 %v629_v14  ;;  %v386_v29 = vunpack.c.l.bf16 %v378_v28  ;;  %v387_v32 = vunpack.c.h.bf16 %v378_v28  ;;  %s3394_s7 = scalar_lea.vmem %s3417_s5, %s2352_s20 }
 0x24a   : > { %v2465_v30 = vpop.eup %2464 }
 0x24b   : > { %v907_v31 = vmul.f32 %v2465_v30, %v2790_v44  ;;  %v886_v23 = vpop.xlane.xlu0 %885  ;;  %v2240_v44 = vor.u32 %v2381_v43, %v2239_v42  ;;  %v390_v42 = vunpack.c.l.bf16 %v382_v41 }
 0x24c   : > { %2466 = vrcp.f32 %v886_v23 }
 0x24d   : > { %2216 = vmatmul.msk.f32.vlgmr.msrb.gmra.mxu3 %vm823_vm0, %v907_v31  ;;  %1154 = vmatpush.bf16.msrb.mxu0 %v2240_v44 }
 0x24e   : > { %1045 = vmatpush.msrb.mxu3 %v631_v16 }
 0x251   : > { %1155 = vmatpush.bf16.msrb.mxu0 %v2236_v55  ;;  %v371_v55 = vlaneseq }
 0x252   : > { %v2467_v37 = vpop.eup %2466 }
 0x253   : > { %v908_v39 = vmul.f32 %v2467_v37, %v2794_v54  ;;  %v889_v40 = vpop.xlane.xlu1 %888  ;;  %v389_v37 = vunpack.c.h.bf16 %v380_v35  ;;  %v372_v56 = vand.u32 127, %v371_v55 }
 0x254   : > { %2468 = vrcp.f32 %v889_v40 }
 0x255   : > { %2217 = vmatmul.msk.f32.vlgmr.msra.gmra.mxu3 %vm823_vm0, %v908_v39  ;;  %1156 = vmatpush.bf16.msrb.mxu0 %v2232_v58  ;;  %vm373_vm1 = vcmp.lt.s32.totalorder %v372_v56, 32 }
 0x256   : > { %1091 = vmatpush.msra.mxu3 %v636_v38 }
 0x259   : > { %1157 = vmatpush.bf16.msrb.mxu0 %v2228_v2 }
 0x25a   : > { %v2469_v47 = vpop.eup %2468 }
 0x25b   : > { %v909_v53 = vmul.f32 %v2469_v47, %v2802_v62  ;;  %v892_v54 = vpop.xlane.xlu2 %891 }
 0x25c   : > { %2470 = vrcp.f32 %v892_v54 }
 0x25d   : > { %2218 = vmatmul.msk.f32.vlgmr.msrb.gmra.mxu3 %vm823_vm0, %v909_v53 }
 0x262   : > { %v2471_v59 = vpop.eup %2470 }
 0x263   : > { %v895_v60 = vpop.xlane.xlu0 %894  ;;  %v910_v61 = vmul.f32 %v2471_v59, %v2807_v4  ;;  %v2224_v4 = vor.u32 %v2377_v3, %v2223_v52  ;;  %v2514_v59 = vmov 0.0  }
 0x264   : > { %2472 = vrcp.f32 %v895_v60  ;;  %v2901_v60 = vsel %vm373_vm1, 1.0, %v2514_v59  ;;  %v2385_v59 = vld [vmem:[%s3415_s3 + $0x28] sm:$0xf0] }
 0x265   : > { %2219 = vmatmul.msk.f32.vlgmr.msrb.gmra.mxu2 %vm823_vm0, %v910_v61  ;;  %1158 = vmatpush.bf16.msrb.mxu0 %v2224_v4 }
 0x26a   : > { %v2473_v62 = vpop.eup %2472 }
 0x26b   : > { %v911_v63 = vmul.f32 %v2473_v62, %v2812_v9 }
 0x26d   : > { %2220 = vmatmul.msk.f32.vlgmr.msra.gmra.mxu3 %vm823_vm0, %v911_v63 }
 0x2b8   : > { %v932_v5 = vpop.f32.mrf.mxu3 }
 0x2c0   : > { %v955_v6 = vpop.f32.mrf.mxu3 }
 0x2c1   : > { %v1096_v7 = vpack.c.bf16 %v955_v6, %v932_v5 }
 0x2c3   : > { %1159 = vmatmul.bf16.vlgmr.msrb.gmra.mxu0 %v1096_v7 }
 0x2c8   : > { %v978_v8 = vpop.f32.mrf.mxu3 }
 0x2d0   : > { %v1001_v9 = vpop.f32.mrf.mxu3 }
 0x2d1   : > { %v1097_v10 = vpack.c.bf16 %v1001_v9, %v978_v8 }
 0x2d3   : > { %1164 = vmatmul.bf16.gmra.mxu0 %v1097_v10 }
 0x2d8   : > { %v1024_v11 = vpop.f32.mrf.mxu3 }
 0x2e0   : > { %v1047_v12 = vpop.f32.mrf.mxu3 }
 0x2e1   : > { %v1098_v13 = vpack.c.bf16 %v1047_v12, %v1024_v11 }
 0x2e3   : > { %1169 = vmatmul.bf16.gmra.mxu0 %v1098_v13 }
 0x2e8   : > { %v1070_v14 = vpop.f32.mrf.mxu2 }
 0x2f0   : > { %v1093_v15 = vpop.f32.mrf.mxu3 }
 0x2f1   : > { %v1099_v16 = vpack.c.bf16 %v1093_v15, %v1070_v14 }
 0x2f3   : > { %1174 = vmatmul.bf16.gmra.mxu0 %v1099_v16  ;;  %v2283_v16 = vld [vmem:[%s3415_s3 + $0x198] sm:$0xf] }
 0x340   : > { %v1160_v20 = vpop.f32.mrf.mxu0 }
 0x341   : > { %v1161_v21 = vadd.f32 %v2434_v18, %v1160_v20  ;;  %v2391_v20 = vld [vmem:[%s3415_s3 + $0x178] sm:$0xf0] }
 0x343   : > { %v1180_v22 = vadd.f32 %v1161_v21, %v384_v19  ;;  %v2279_v19 = vld [vmem:[%s3415_s3 + $0x160] sm:$0xf] }
 0x345   : > { %1188 = vadd.xlane.f32.xlu1 %v1180_v22 }
 0x348   : > { %v1162_v48 = vpop.f32.mrf.mxu0 }
 0x349   : > { %v1163_v25 = vadd.f32 %v2434_v18, %v1162_v48  ;;  %v2275_v48 = vld [vmem:[%s3415_s3 + $0x128] sm:$0xf] }
 0x34b   : > { %v1181_v27 = vadd.f32 %v1163_v25, %v385_v24  ;;  %v2390_v25 = vld [vmem:[%s3415_s3 + $0x140] sm:$0xf0] }
 0x34d   : > { %1190 = vadd.xlane.f32.xlu2 %v1181_v27 }
 0x350   : > { %v1165_v30 = vpop.f32.mrf.mxu0 }
 0x351   : > { %v1166_v31 = vadd.f32 %v2434_v18, %v1165_v30 }
 0x353   : > { %v1182_v23 = vadd.f32 %v1166_v31, %v386_v29  ;;  %v2276_v29 = vor.u32 %v2390_v25, %v2275_v48 }
 0x355   : > { %1192 = vadd.xlane.f32.xlu0 %v1182_v23 }
 0x358   : > { %v1167_v49 = vpop.f32.mrf.mxu0 }
 0x359   : > { %v1168_v33 = vadd.f32 %v2434_v18, %v1167_v49 }
 0x35b   : > { %v1183_v34 = vadd.f32 %v1168_v33, %v387_v32 }
 0x35d   : > { %1194 = vadd.xlane.f32.xlu1 %v1183_v34 }
 0x360   : > { %v1170_v51 = vpop.f32.mrf.mxu0 }
 0x361   : > { %v1171_v36 = vadd.f32 %v2434_v18, %v1170_v51 }
 0x363   : > { %v1184_v26 = vadd.f32 %v1171_v36, %v388_v50 }
 0x365   : > { %1196 = vadd.xlane.f32.xlu2 %v1184_v26 }
 0x368   : > { %v1172_v38 = vpop.f32.mrf.mxu0 }
 0x369   : > { %v1173_v39 = vadd.f32 %v2434_v18, %v1172_v38 }
 0x36b   : > { %v2891_v40 = vadd.f32 %v1173_v39, %v389_v37  ;;  %v2271_v39 = vld [vmem:[%s3415_s3 + $0xf0] sm:$0xf] }
 0x36d   : > { %1198 = vadd.xlane.f32.xlu0 %v2891_v40 }
 0x370   : > { %v1175_v43 = vpop.f32.mrf.mxu0 }
 0x371   : > { %v1176_v44 = vadd.f32 %v2434_v18, %v1175_v43  ;;  %v2388_v43 = vld [vmem:[%s3415_s3 + $0xd0] sm:$0xf0] }
 0x373   : > { %v2895_v45 = vadd.f32 %v1176_v44, %v390_v42  ;;  %v2267_v42 = vld [vmem:[%s3415_s3 + $0xb8] sm:$0xf] }
 0x374   : > { %v2268_v44 = vor.u32 %v2388_v43, %v2267_v42 }
 0x375   : > { %1200 = vadd.xlane.f32.xlu1 %v2895_v45 }
 0x378   : > { %v1177_v47 = vpop.f32.mrf.mxu0 }
 0x379   : > { %v1178_v53 = vadd.f32 %v2434_v18, %v1177_v47  ;;  %v2284_v18 = vor.u32 %v2392_v17, %v2283_v16 }
 0x37b   : > { %v2898_v54 = vadd.f32 %v1178_v53, %v391_v46  ;;  %1433 = vmatpush.bf16.msrb.mxu1 %v2284_v18  ;;  %v2387_v46 = vld [vmem:[%s3415_s3 + $0x98] sm:$0xf0]  ;;  %v2259_v53 = vld [vmem:[%s3415_s3 + $0x48] sm:$0xf] }
 0x37d   : > { %1202 = vadd.xlane.f32.xlu2 %v2898_v54 }
 0x3b8   : > { %v1189_v57 = vpop.xlane.xlu1 %1188 }
 0x3b9   : > { %v1204_v58 = vmul.f32 0.03125, %v1189_v57 }
 0x3bb   : > { %v1212_v61 = vsub.f32 %v1180_v22, %v1204_v58  ;;  %v2280_v22 = vor.u32 %v2391_v20, %v2279_v19  ;;  %v2255_v58 = vld [vmem:[%s3415_s3 + $0x10] sm:$0xf] }
 0x3bd   : > { %v2904_v62 = vmul.f32 %v2901_v60, %v1212_v61  ;;  %1434 = vmatpush.bf16.msrb.mxu1 %v2280_v22  ;;  %v2256_v61 = vor.u32 %v2385_v59, %v2255_v58 }
 0x3bf   : > { %v1228_v63 = vmul.f32 %v2904_v62, %v2904_v62 }
 0x3c0   : > { %v1191_v0 = vpop.xlane.xlu2 %1190 }
 0x3c1   : > { %v1205_v1 = vmul.f32 0.03125, %v1191_v0  ;;  %1236 = vadd.xlane.f32.xlu0 %v1228_v63  ;;  %1435 = vmatpush.bf16.msrb.mxu1 %v2276_v29 }
 0x3c3   : > { %v1213_v2 = vsub.f32 %v1181_v27, %v1205_v1 }
 0x3c5   : > { %v2909_v52 = vmul.f32 %v2901_v60, %v1213_v2 }
 0x3c7   : > { %v1229_v3 = vmul.f32 %v2909_v52, %v2909_v52 }
 0x3c8   : > { %v1193_v4 = vpop.xlane.xlu0 %1192 }
 0x3c9   : > { %v1206_v5 = vmul.f32 0.03125, %v1193_v4  ;;  %1238 = vadd.xlane.f32.xlu1 %v1229_v3 }
 0x3cb   : > { %v1214_v6 = vsub.f32 %v1182_v23, %v1206_v5 }
 0x3cd   : > { %v2914_v7 = vmul.f32 %v2901_v60, %v1214_v6 }
 0x3cf   : > { %v1230_v8 = vmul.f32 %v2914_v7, %v2914_v7 }
 0x3d0   : > { %v1195_v9 = vpop.xlane.xlu1 %1194 }
 0x3d1   : > { %v1207_v10 = vmul.f32 0.03125, %v1195_v9  ;;  %1240 = vadd.xlane.f32.xlu2 %v1230_v8 }
 0x3d3   : > { %v1215_v11 = vsub.f32 %v1183_v34, %v1207_v10 }
 0x3d5   : > { %v2919_v12 = vmul.f32 %v2901_v60, %v1215_v11 }
 0x3d7   : > { %v1231_v13 = vmul.f32 %v2919_v12, %v2919_v12 }
 0x3d8   : > { %v1197_v14 = vpop.xlane.xlu2 %1196 }
 0x3d9   : > { %v1208_v15 = vmul.f32 0.03125, %v1197_v14  ;;  %1242 = vadd.xlane.f32.xlu0 %v1231_v13 }
 0x3db   : > { %v1216_v21 = vsub.f32 %v1184_v26, %v1208_v15 }
 0x3dd   : > { %v2936_v24 = vmul.f32 %v2901_v60, %v1216_v21 }
 0x3df   : > { %v1232_v27 = vmul.f32 %v2936_v24, %v2936_v24 }
 0x3e0   : > { %v1199_v28 = vpop.xlane.xlu0 %1198 }
 0x3e1   : > { %v1209_v30 = vmul.f32 0.03125, %v1199_v28  ;;  %1244 = vadd.xlane.f32.xlu1 %v1232_v27  ;;  %v2998_v27 = vld [vmem:[%s3416_s4 + $0x4] ss:$0 sm:$0xff] }
 0x3e3   : > { %v1217_v31 = vsub.f32 %v2891_v40, %v1209_v30  ;;  %v2389_v40 = vld [vmem:[%s3415_s3 + $0x108] sm:$0xf0] }
 0x3e4   : > { %v2272_v41 = vor.u32 %v2389_v40, %v2271_v39 }
 0x3e5   : > { %v2948_v23 = vmul.f32 %v2901_v60, %v1217_v31 }
 0x3e6   : > { %1436 = vmatpush.bf16.msrb.mxu1 %v2272_v41 }
 0x3e7   : > { %v1233_v32 = vmul.f32 %v2948_v23, %v2948_v23 }
 0x3e8   : > { %v1201_v49 = vpop.xlane.xlu1 %1200 }
 0x3e9   : > { %v1210_v33 = vmul.f32 0.03125, %v1201_v49  ;;  %1246 = vadd.xlane.f32.xlu2 %v1233_v32 }
 0x3ea   : > { %1437 = vmatpush.bf16.msrb.mxu1 %v2268_v44 }
 0x3eb   : > { %v1218_v34 = vsub.f32 %v2895_v45, %v1210_v33  ;;  %v2263_v45 = vld [vmem:[%s3415_s3 + $0x80] sm:$0xf] }
 0x3ec   : > { %v2264_v47 = vor.u32 %v2387_v46, %v2263_v45 }
 0x3ed   : > { %v2954_v35 = vmul.f32 %v2901_v60, %v1218_v34 }
 0x3ee   : > { %1438 = vmatpush.bf16.msrb.mxu1 %v2264_v47 }
 0x3ef   : > { %v1234_v50 = vmul.f32 %v2954_v35, %v2954_v35 }
 0x3f0   : > { %v1203_v51 = vpop.xlane.xlu2 %1202 }
 0x3f1   : > { %v1211_v36 = vmul.f32 0.03125, %v1203_v51  ;;  %1248 = vadd.xlane.f32.xlu0 %v1234_v50 }
 0x3f3   : > { %v1219_v26 = vsub.f32 %v2898_v54, %v1211_v36  ;;  %v2386_v54 = vld [vmem:[%s3415_s3 + $0x60] sm:$0xf0] }
 0x3f4   : > { %v2260_v55 = vor.u32 %v2386_v54, %v2259_v53 }
 0x3f5   : > { %v2960_v37 = vmul.f32 %v2901_v60, %v1219_v26 }
 0x3f6   : > { %1439 = vmatpush.bf16.msrb.mxu1 %v2260_v55 }
 0x3f7   : > { %v1235_v38 = vmul.f32 %v2960_v37, %v2960_v37 }
 0x3f9   : > { %1250 = vadd.xlane.f32.xlu1 %v1235_v38 }
 0x3fa   : > { %1440 = vmatpush.bf16.msrb.mxu1 %v2256_v61 }
 0x434   : > { %v1237_v56 = vpop.xlane.xlu0 %1236 }
 0x435   : > { %v1252_v57 = vmul.f32 0.03125, %v1237_v56 }
 0x437   : > { %v1260_v63 = vadd.f32 1e-05, %v1252_v57 }
 0x439   : > { %2474 = vrsqrt.f32 %v1260_v63  ;;  %vm1274_vm3 = vweird.f32 %v1260_v63 }
 0x43c   : > { %v1239_v0 = vpop.xlane.xlu1 %1238 }
 0x43d   : > { %v1253_v1 = vmul.f32 0.03125, %v1239_v0 }
 0x43f   : > { %v2475_v2 = vpop.eup %2474  ;;  %v1261_v3 = vadd.f32 1e-05, %v1253_v1 }
 0x440   : > { %v1269_v4 = vmul.f32 %v2475_v2, %v1260_v63  ;;  %vm1275_vm2 = vweird.f32 %v2475_v2 }
 0x441   : > { %2476 = vrsqrt.f32 %v1261_v3  ;;  %vm1276_vm4 = vmor %vm1274_vm3, %vm1275_vm2  ;;  %vm1284_vm6 = vweird.f32 %v1261_v3 }
 0x442   : > { %v1270_v5 = vmul.f32 %v2475_v2, %v1269_v4 }
 0x444   : > { %v1271_v6 = vmul.f32 0.5, %v1270_v5  ;;  %v1241_v8 = vpop.xlane.xlu2 %1240 }
 0x445   : > { %v1254_v9 = vmul.f32 0.03125, %v1241_v8 }
 0x446   : > { %v1272_v10 = vsub.f32 1.5, %v1271_v6 }
 0x447   : > { %v2477_v11 = vpop.eup %2476  ;;  %v1262_v13 = vadd.f32 1e-05, %v1254_v9 }
 0x448   : > { %v1273_v14 = vmul.f32 %v2475_v2, %v1272_v10  ;;  %v1279_v15 = vmul.f32 %v2477_v11, %v1261_v3  ;;  %vm1285_vm5 = vweird.f32 %v2477_v11 }
 0x449   : > { %2478 = vrsqrt.f32 %v1262_v13  ;;  %vm1286_vm7 = vmor %vm1284_vm6, %vm1285_vm5  ;;  %vm1294_vm9 = vweird.f32 %v1262_v13 }
 0x44a   : > { %v1280_v16 = vmul.f32 %v2477_v11, %v1279_v15  ;;  %v1277_v17 = vsel %vm1276_vm4, %v2475_v2, %v1273_v14  ;;  %v2315_v15 = vld [vmem:[%s3415_s3 + $0x19c] sm:$0xf] }
 0x44b   : > { %v1348_v48 = vmul.f32 %v1277_v17, %v2904_v62  ;;  %v3005_v62 = vld [vmem:[%s3416_s4 + $0x5] ss:$0 sm:$0xff] }
 0x44c   : > { %v1281_v18 = vmul.f32 0.5, %v1280_v16  ;;  %v1243_v19 = vpop.xlane.xlu0 %1242  ;;  %v2400_v16 = vld [vmem:[%s3415_s3 + $0x1b4] sm:$0xf0]  ;;  %v2311_v17 = vld [vmem:[%s3415_s3 + $0x164] sm:$0xf] }
 0x44d   : > { %v1255_v20 = vmul.f32 0.03125, %v1243_v19  ;;  %v1359_v49 = vmul.f32 %v2998_v27, %v1348_v48 }
 0x44e   : > { %v1282_v21 = vsub.f32 1.5, %v1281_v18 }
 0x44f   : > { %v2479_v22 = vpop.eup %2478  ;;  %v1263_v25 = vadd.f32 1e-05, %v1255_v20  ;;  %v3009_v39 = vadd.f32 %v3005_v62, %v1359_v49  ;;  %v2398_v49 = vld [vmem:[%s3415_s3 + $0x144] sm:$0xf0] }
 0x450   : > { %v1283_v28 = vmul.f32 %v2477_v11, %v1282_v21  ;;  %v1289_v29 = vmul.f32 %v2479_v22, %v1262_v13  ;;  %vm1295_vm8 = vweird.f32 %v2479_v22  ;;  %v2316_v21 = vor.u32 %v2400_v16, %v2315_v15  ;;  %v2287_v13 = vld [vmem:[%s3415_s3 + $0x14] sm:$0xf] }
 0x451   : > { %2480 = vrsqrt.f32 %v1263_v25  ;;  %vm1296_vm10 = vmor %vm1294_vm9, %vm1295_vm8  ;;  %vm1304_vm12 = vweird.f32 %v1263_v25 }
 0x452   : > { %v1287_v30 = vsel %vm1286_vm7, %v2477_v11, %v1283_v28  ;;  %v1290_v31 = vmul.f32 %v2479_v22, %v1289_v29  ;;  %1525 = vmatpush.bf16.msra.mxu0 %v2316_v21  ;;  %2413 = vmatpush.bf16.msra.mxu2 %v2316_v21 }
 0x453   : > { %v1349_v32 = vmul.f32 %v1287_v30, %v2909_v52 }
 0x454   : > { %v1291_v33 = vmul.f32 0.5, %v1290_v31  ;;  %v1245_v34 = vpop.xlane.xlu1 %1244 }
 0x455   : > { %v1256_v50 = vmul.f32 0.03125, %v1245_v34  ;;  %v1360_v51 = vmul.f32 %v2998_v27, %v1349_v32  ;;  %v2307_v32 = vld [vmem:[%s3415_s3 + $0x12c] sm:$0xf] }
 0x456   : > { %v1292_v36 = vsub.f32 1.5, %v1291_v33 }
 0x457   : > { %v2481_v26 = vpop.eup %2480  ;;  %v1264_v38 = vadd.f32 1e-05, %v1256_v50  ;;  %v3012_v52 = vadd.f32 %v3005_v62, %v1360_v51 }
 0x458   : > { %v1293_v40 = vmul.f32 %v2479_v22, %v1292_v36  ;;  %v1299_v41 = vmul.f32 %v2481_v26, %v1263_v25  ;;  %vm1305_vm11 = vweird.f32 %v2481_v26  ;;  %v2308_v36 = vor.u32 %v2398_v49, %v2307_v32 }
 0x459   : > { %2482 = vrsqrt.f32 %v1264_v38  ;;  %v1378_v42 = vpack.c.bf16 %v3012_v52, %v3009_v39  ;;  %vm1306_vm13 = vmor %vm1304_vm12, %vm1305_vm11  ;;  %vm1314_vm15 = vweird.f32 %v1264_v38 }
 0x45a   : > { %v1300_v43 = vmul.f32 %v2481_v26, %v1299_v41  ;;  %v1297_v46 = vsel %vm1296_vm10, %v2479_v22, %v1293_v40  ;;  %v2399_v22 = vld [vmem:[%s3415_s3 + $0x17c] sm:$0xf0]  ;;  %v2397_v40 = vld [vmem:[%s3415_s3 + $0x10c] sm:$0xf0] }
 0x45b   : > { %1441 = vmatmul.bf16.vlgmr.msrb.gmra.mxu1 %v1378_v42  ;;  %v1350_v56 = vmul.f32 %v1297_v46, %v2914_v7  ;;  %v2312_v28 = vor.u32 %v2399_v22, %v2311_v17  ;;  %v2437_v17 = vld [vmem:[%s3416_s4 + $0x6] ss:$0 sm:$0xff] }
 0x45c   : > { %v1301_v44 = vmul.f32 0.5, %v1300_v43  ;;  %v1247_v45 = vpop.xlane.xlu2 %1246 }
 0x45d   : > { %v1257_v47 = vmul.f32 0.03125, %v1247_v45  ;;  %v1361_v0 = vmul.f32 %v2998_v27, %v1350_v56  ;;  %1526 = vmatpush.bf16.msra.mxu0 %v2312_v28  ;;  %2414 = vmatpush.bf16.msra.mxu2 %v2312_v28 }
 0x45e   : > { %v1302_v53 = vsub.f32 1.5, %v1301_v44 }
 0x45f   : > { %v2483_v54 = vpop.eup %2482  ;;  %v1265_v55 = vadd.f32 1e-05, %v1257_v47  ;;  %v3021_v8 = vadd.f32 %v3005_v62, %v1361_v0 }
 0x460   : > { %v1303_v57 = vmul.f32 %v2481_v26, %v1302_v53  ;;  %v1309_v58 = vmul.f32 %v2483_v54, %v1264_v38  ;;  %vm1315_vm14 = vweird.f32 %v2483_v54  ;;  %v2303_v38 = vld [vmem:[%s3415_s3 + $0xf4] sm:$0xf] }
 0x461   : > { %2484 = vrsqrt.f32 %v1265_v55  ;;  %vm3028_vm0 = vmor %vm1314_vm15, %vm1315_vm14  ;;  %vm1324_vm2 = vweird.f32 %v1265_v55  ;;  %1527 = vmatpush.bf16.msra.mxu0 %v2308_v36  ;;  %v2304_v44 = vor.u32 %v2397_v40, %v2303_v38  ;;  %2415 = vmatpush.bf16.msra.mxu2 %v2308_v36 }
 0x462   : > { %v1310_v59 = vmul.f32 %v2483_v54, %v1309_v58  ;;  %v1307_v61 = vsel %vm1306_vm13, %v2481_v26, %v1303_v57 }
 0x463   : > { %v1351_v63 = vmul.f32 %v1307_v61, %v2919_v12 }
 0x464   : > { %v1311_v1 = vmul.f32 0.5, %v1310_v59  ;;  %v1249_v2 = vpop.xlane.xlu0 %1248 }
 0x465   : > { %v1258_v3 = vmul.f32 0.03125, %v1249_v2  ;;  %v1362_v4 = vmul.f32 %v2998_v27, %v1351_v63  ;;  %1528 = vmatpush.bf16.msra.mxu0 %v2304_v44  ;;  %2416 = vmatpush.bf16.msra.mxu2 %v2304_v44 }
 0x466   : > { %v1312_v5 = vsub.f32 1.5, %v1311_v1 }
 0x467   : > { %v2485_v6 = vpop.eup %2484  ;;  %v1266_v7 = vadd.f32 1e-05, %v1258_v3  ;;  %v3024_v9 = vadd.f32 %v3005_v62, %v1362_v4 }
 0x468   : > { %v1313_v10 = vmul.f32 %v2483_v54, %v1312_v5  ;;  %v1319_v11 = vmul.f32 %v2485_v6, %v1265_v55  ;;  %vm1325_vm1 = vweird.f32 %v2485_v6 }
 0x469   : > { %2486 = vrsqrt.f32 %v1266_v7  ;;  %v1379_v12 = vpack.c.bf16 %v3024_v9, %v3021_v8  ;;  %vm1326_vm3 = vmor %vm1324_vm2, %vm1325_vm1  ;;  %vm1334_vm5 = vweird.f32 %v1266_v7 }
 0x46a   : > { %v1320_v14 = vmul.f32 %v2485_v6, %v1319_v11  ;;  %v1317_v20 = vsel %vm3028_vm0, %v2483_v54, %v1313_v10  ;;  %v2291_v10 = vld [vmem:[%s3415_s3 + $0x4c] sm:$0xf]  ;;  %v2394_v11 = vld [vmem:[%s3415_s3 + $0x64] sm:$0xf0] }
 0x46b   : > { %1446 = vmatmul.bf16.gmra.mxu1 %v1379_v12  ;;  %v1352_v31 = vmul.f32 %v1317_v20, %v2936_v24  ;;  %v2292_v12 = vor.u32 %v2394_v11, %v2291_v10  ;;  %v1754_v11 = vld [vmem:[%s3141_s14 + $0x10] sm:$0xff] }
 0x46c   : > { %v1321_v18 = vmul.f32 0.5, %v1320_v14  ;;  %v1251_v19 = vpop.xlane.xlu1 %1250  ;;  %v2393_v14 = vld [vmem:[%s3415_s3 + $0x2c] sm:$0xf0]  ;;  %vm1762_vm11 = vcmp.gt.f32.partialorder %v1754_v11, 0.5 }
 0x46d   : > { %v1259_v48 = vmul.f32 0.03125, %v1251_v19  ;;  %v1363_v26 = vmul.f32 %v2998_v27, %v1352_v31  ;;  %v2288_v15 = vor.u32 %v2393_v14, %v2287_v13  ;;  %v1752_v13 = vld [vmem:[%s3141_s14] sm:$0xff] }
 0x46e   : > { %v1322_v25 = vsub.f32 1.5, %v1321_v18  ;;  %vm1760_vm13 = vcmp.gt.f32.partialorder %v1752_v13, 0.5 }
 0x46f   : > { %v2487_v29 = vpop.eup %2486  ;;  %v1267_v30 = vadd.f32 1e-05, %v1259_v48 }
 0x470   : > { %v1323_v33 = vmul.f32 %v2485_v6, %v1322_v25  ;;  %v1329_v34 = vmul.f32 %v2487_v29, %v1266_v7  ;;  %vm1335_vm4 = vweird.f32 %v2487_v29 }
 0x471   : > { %2488 = vrsqrt.f32 %v1267_v30  ;;  %vm1336_vm6 = vmor %vm1334_vm5, %vm1335_vm4  ;;  %vm1344_vm8 = vweird.f32 %v1267_v30 }
 0x472   : > { %v1330_v50 = vmul.f32 %v2487_v29, %v1329_v34  ;;  %v1327_v51 = vsel %vm1326_vm3, %v2485_v6, %v1323_v33 }
 0x473   : > { %v1353_v24 = vmul.f32 %v1327_v51, %v2948_v23  ;;  %v3063_v23 = vadd.f32 %v3005_v62, %v1363_v26 }
 0x474   : > { %v1331_v41 = vmul.f32 0.5, %v1330_v50 }
 0x475   : > { %v1364_v42 = vmul.f32 %v2998_v27, %v1353_v24 }
 0x476   : > { %v1332_v43 = vsub.f32 1.5, %v1331_v41 }
 0x477   : > { %v2489_v45 = vpop.eup %2488  ;;  %v3066_v46 = vadd.f32 %v3005_v62, %v1364_v42 }
 0x478   : > { %v1333_v47 = vmul.f32 %v2487_v29, %v1332_v43  ;;  %v1339_v53 = vmul.f32 %v2489_v45, %v1267_v30  ;;  %vm1345_vm7 = vweird.f32 %v2489_v45 }
 0x479   : > { %v1380_v54 = vpack.c.bf16 %v3066_v46, %v3063_v23  ;;  %vm1346_vm9 = vmor %vm1344_vm8, %vm1345_vm7 }
 0x47a   : > { %v1340_v55 = vmul.f32 %v2489_v45, %v1339_v53  ;;  %v1337_v57 = vsel %vm1336_vm6, %v2487_v29, %v1333_v47  ;;  %v2438_v47 = vld [vmem:[%s3416_s4 + $0x7] ss:$0 sm:$0xff] }
 0x47b   : > { %1451 = vmatmul.bf16.gmra.mxu1 %v1380_v54  ;;  %v1354_v59 = vmul.f32 %v1337_v57, %v2954_v35  ;;  %v2299_v35 = vld [vmem:[%s3415_s3 + $0xbc] sm:$0xf] }
 0x47c   : > { %v1341_v56 = vmul.f32 0.5, %v1340_v55 }
 0x47d   : > { %v1365_v1 = vmul.f32 %v2998_v27, %v1354_v59 }
 0x47e   : > { %v1342_v58 = vsub.f32 1.5, %v1341_v56 }
 0x47f   : > { %v3075_v3 = vadd.f32 %v3005_v62, %v1365_v1 }
 0x480   : > { %v1343_v61 = vmul.f32 %v2489_v45, %v1342_v58 }
 0x482   : > { %v1347_v63 = vsel %vm1346_vm9, %v2489_v45, %v1343_v61 }
 0x483   : > { %v1355_v0 = vmul.f32 %v1347_v63, %v2960_v37  ;;  %v2396_v37 = vld [vmem:[%s3415_s3 + $0xd4] sm:$0xf0] }
 0x484   : > { %v2300_v6 = vor.u32 %v2396_v37, %v2299_v35 }
 0x485   : > { %v1366_v2 = vmul.f32 %v2998_v27, %v1355_v0  ;;  %v2295_v27 = vld [vmem:[%s3415_s3 + $0x84] sm:$0xf] }
 0x486   : > { %1529 = vmatpush.bf16.msra.mxu0 %v2300_v6  ;;  %2417 = vmatpush.bf16.msra.mxu2 %v2300_v6 }
 0x487   : > { %v3078_v4 = vadd.f32 %v3005_v62, %v1366_v2  ;;  %v2395_v62 = vld [vmem:[%s3415_s3 + $0x9c] sm:$0xf0] }
 0x488   : > { %v2296_v7 = vor.u32 %v2395_v62, %v2295_v27 }
 0x489   : > { %v1381_v5 = vpack.c.bf16 %v3078_v4, %v3075_v3 }
 0x48a   : > { %1530 = vmatpush.bf16.msra.mxu0 %v2296_v7  ;;  %2418 = vmatpush.bf16.msra.mxu2 %v2296_v7 }
 0x48b   : > { %1456 = vmatmul.bf16.gmra.mxu1 %v1381_v5 }
 0x48e   : > { %1531 = vmatpush.bf16.msra.mxu0 %v2292_v12  ;;  %2419 = vmatpush.bf16.msra.mxu2 %v2292_v12  ;;  %v1756_v12 = vld [vmem:[%s3141_s14 + $0x20] sm:$0xff] }
 0x48f   : > { %vm1764_vm12 = vcmp.gt.f32.partialorder %v1756_v12, 0.5 }
 0x492   : > { %1532 = vmatpush.bf16.msra.mxu0 %v2288_v15  ;;  %2420 = vmatpush.bf16.msra.mxu2 %v2288_v15 }
 0x4d8   : > { %v1442_v16 = vpop.f32.mrf.mxu1 }
 0x4d9   : > { %v1443_v18 = vadd.f32 %v2437_v17, %v1442_v16  ;;  %v1755_v16 = vld [vmem:[%s3141_s14 + $0x18] sm:$0xff] }
 0x4da   : > { %vm1763_vm14 = vcmp.gt.f32.partialorder %v1755_v16, 0.5 }
 0x4db   : > { %v1462_v21 = vmax.f32 %v1443_v18, 0.0 }
 0x4e0   : > { %v1444_v19 = vpop.f32.mrf.mxu1 }
 0x4e1   : > { %v1445_v20 = vadd.f32 %v2437_v17, %v1444_v19 }
 0x4e3   : > { %v1463_v22 = vmax.f32 %v1445_v20, 0.0 }
 0x4e5   : > { %v1470_v48 = vpack.c.bf16 %v1463_v22, %v1462_v21 }
 0x4e7   : > { %1533 = vmatmul.bf16.vlgmr.msra.gmra.mxu0 %v1470_v48 }
 0x4e8   : > { %v1447_v25 = vpop.f32.mrf.mxu1 }
 0x4e9   : > { %v1448_v28 = vadd.f32 %v2437_v17, %v1447_v25 }
 0x4eb   : > { %v1464_v31 = vmax.f32 %v1448_v28, 0.0 }
 0x4f0   : > { %v1449_v29 = vpop.f32.mrf.mxu1 }
 0x4f1   : > { %v1450_v30 = vadd.f32 %v2437_v17, %v1449_v29 }
 0x4f3   : > { %v1465_v32 = vmax.f32 %v1450_v30, 0.0 }
 0x4f5   : > { %v1471_v49 = vpack.c.bf16 %v1465_v32, %v1464_v31 }
 0x4f7   : > { %1538 = vmatmul.bf16.vlgmr.msra.gmra.mxu2 %v1471_v49 }
 0x4f8   : > { %v1452_v33 = vpop.f32.mrf.mxu1 }
 0x4f9   : > { %v1453_v34 = vadd.f32 %v2437_v17, %v1452_v33 }
 0x4fb   : > { %v1466_v36 = vmax.f32 %v1453_v34, 0.0 }
 0x500   : > { %v1454_v50 = vpop.f32.mrf.mxu1 }
 0x501   : > { %v1455_v51 = vadd.f32 %v2437_v17, %v1454_v50 }
 0x503   : > { %v1467_v24 = vmax.f32 %v1455_v51, 0.0 }
 0x505   : > { %v1472_v26 = vpack.c.bf16 %v1467_v24, %v1466_v36 }
 0x507   : > { %1543 = vmatmul.bf16.gmra.mxu2 %v1472_v26 }
 0x508   : > { %v1457_v38 = vpop.f32.mrf.mxu1 }
 0x509   : > { %v1458_v40 = vadd.f32 %v2437_v17, %v1457_v38 }
 0x50b   : > { %v1468_v43 = vmax.f32 %v1458_v40, 0.0 }
 0x510   : > { %v1459_v41 = vpop.f32.mrf.mxu1 }
 0x511   : > { %v1460_v42 = vadd.f32 %v2437_v17, %v1459_v41 }
 0x513   : > { %v1469_v44 = vmax.f32 %v1460_v42, 0.0 }
 0x515   : > { %v1473_v45 = vpack.c.bf16 %v1469_v44, %v1468_v43 }
 0x517   : > { %1548 = vmatmul.bf16.gmra.mxu2 %v1473_v45 }
 0x564   : > { %v1534_v53 = vpop.f32.mrf.mxu0 }
 0x565   : > { %v1535_v54 = vadd.f32 %v2438_v47, %v1534_v53 }
 0x567   : > { %v1554_v55 = vadd.f32 %v1535_v54, %v3009_v39  ;;  %v2515_v39 = vmov 0  }
 0x568   : > { %2432 = vset.pattern.permute.xlu1 %v2515_v39  ;;  %2433 = vset.pattern.permute.xlu2 %v2515_v39  ;;  %v1770_v14 = vsel %vm1762_vm11, 1, %v2515_v39  ;;  %v1772_v15 = vsel %vm1764_vm12, 1, %v2515_v39  ;;  %v1771_v17 = vsel %vm1763_vm14, 1, %v2515_v39 }
 0x569   : > { %1562 = vadd.xlane.f32.xlu2 %v1554_v55  ;;  %2431 = vset.pattern.permute.xlu0 %v2515_v39 }
 0x56c   : > { %v1536_v56 = vpop.f32.mrf.mxu0 }
 0x56d   : > { %v1537_v57 = vadd.f32 %v2438_v47, %v1536_v56 }
 0x56f   : > { %v1555_v58 = vadd.f32 %v1537_v57, %v3012_v52 }
 0x571   : > { %1564 = vadd.xlane.f32.xlu0 %v1555_v58 }
 0x57a   : > { %v1539_v59 = vpop.f32.mrf.mxu2 }
 0x57b   : > { %v1540_v61 = vadd.f32 %v2438_v47, %v1539_v59 }
 0x57d   : > { %v3115_v63 = vadd.f32 %v1540_v61, %v3021_v8 }
 0x57f   : > { %1566 = vadd.xlane.f32.xlu1 %v3115_v63 }
 0x582   : > { %v1541_v0 = vpop.f32.mrf.mxu2 }
 0x583   : > { %v1542_v1 = vadd.f32 %v2438_v47, %v1541_v0 }
 0x585   : > { %v3119_v2 = vadd.f32 %v1542_v1, %v3024_v9  ;;  %v1759_v1 = vld [vmem:[%s3141_s14 + $0x38] sm:$0xff] }
 0x586   : > { %vm1767_vm15 = vcmp.gt.f32.partialorder %v1759_v1, 0.5 }
 0x587   : > { %1568 = vadd.xlane.f32.xlu2 %v3119_v2 }
 0x58a   : > { %v1544_v52 = vpop.f32.mrf.mxu2 }
 0x58b   : > { %v1545_v8 = vadd.f32 %v2438_v47, %v1544_v52 }
 0x58d   : > { %v3126_v5 = vadd.f32 %v1545_v8, %v3063_v23  ;;  %v1775_v8 = vsel %vm1767_vm15, 1, %v2515_v39 }
 0x58f   : > { %1570 = vadd.xlane.f32.xlu0 %v3126_v5 }
 0x592   : > { %v1546_v35 = vpop.f32.mrf.mxu2 }
 0x593   : > { %v1547_v9 = vadd.f32 %v2438_v47, %v1546_v35 }
 0x595   : > { %v3130_v37 = vadd.f32 %v1547_v9, %v3066_v46  ;;  %v1757_v9 = vld [vmem:[%s3141_s14 + $0x28] sm:$0xff] }
 0x596   : > { %vm1765_vm1 = vcmp.gt.f32.partialorder %v1757_v9, 0.5 }
 0x597   : > { %1572 = vadd.xlane.f32.xlu1 %v3130_v37 }
 0x59a   : > { %v1549_v6 = vpop.f32.mrf.mxu2 }
 0x59b   : > { %v1550_v27 = vadd.f32 %v2438_v47, %v1549_v6 }
 0x59d   : > { %v3134_v62 = vadd.f32 %v1550_v27, %v3075_v3  ;;  %v1753_v3 = vld [vmem:[%s3141_s14 + $0x8] sm:$0xff] }
 0x59e   : > { %vm1761_vm10 = vcmp.gt.f32.partialorder %v1753_v3, 0.5 }
 0x59f   : > { %1574 = vadd.xlane.f32.xlu2 %v3134_v62  ;;  %v1769_v10 = vsel %vm1761_vm10, 1, %v2515_v39 }
 0x5a2   : > { %v1551_v7 = vpop.f32.mrf.mxu2 }
 0x5a3   : > { %v1552_v23 = vadd.f32 %v2438_v47, %v1551_v7 }
 0x5a5   : > { %v3144_v46 = vadd.f32 %v1552_v23, %v3078_v4  ;;  %v1768_v4 = vsel %vm1760_vm13, 1, %v2515_v39 }
 0x5a7   : > { %1576 = vadd.xlane.f32.xlu0 %v3144_v46 }
 0x5b0   : > { %1780 = vperm.xlu1 %2432, %v1769_v10  }
 0x5b7   : > { %1783 = vperm.xlu2 %2433, %v1770_v14  }
 0x5b8   : > { %1789 = vperm.xlu1 %2432, %v1772_v15  }
 0x5bb   : > { %1777 = vperm.xlu0 %2431, %v1768_v4  }
 0x5bf   : > { %1786 = vperm.xlu2 %2433, %v1771_v17  }
 0x5dc   : > { %v1563_v18 = vpop.xlane.xlu2 %1562 }
 0x5dd   : > { %v1578_v19 = vmul.f32 0.03125, %v1563_v18 }
 0x5df   : > { %v1586_v20 = vsub.f32 %v1554_v55, %v1578_v19 }
 0x5e1   : > { %v3158_v21 = vmul.f32 %v2901_v60, %v1586_v20 }
 0x5e3   : > { %v1602_v22 = vmul.f32 %v3158_v21, %v3158_v21 }
 0x5e4   : > { %v1565_v48 = vpop.xlane.xlu0 %1564 }
 0x5e5   : > { %v1579_v25 = vmul.f32 0.03125, %v1565_v48  ;;  %1610 = vadd.xlane.f32.xlu1 %v1602_v22 }
 0x5e7   : > { %v1587_v28 = vsub.f32 %v1555_v58, %v1579_v25 }
 0x5e9   : > { %v3163_v29 = vmul.f32 %v2901_v60, %v1587_v28 }
 0x5eb   : > { %v1603_v30 = vmul.f32 %v3163_v29, %v3163_v29 }
 0x5ed   : > { %1612 = vadd.xlane.f32.xlu2 %v1603_v30 }
 0x5f2   : > { %v1567_v31 = vpop.xlane.xlu1 %1566 }
 0x5f3   : > { %v1580_v32 = vmul.f32 0.03125, %v1567_v31 }
 0x5f5   : > { %v1588_v49 = vsub.f32 %v3115_v63, %v1580_v32 }
 0x5f7   : > { %v3169_v33 = vmul.f32 %v2901_v60, %v1588_v49 }
 0x5f9   : > { %v1604_v34 = vmul.f32 %v3169_v33, %v3169_v33 }
 0x5fa   : > { %v1569_v50 = vpop.xlane.xlu2 %1568 }
 0x5fb   : > { %v1581_v51 = vmul.f32 0.03125, %v1569_v50  ;;  %1614 = vadd.xlane.f32.xlu0 %v1604_v34 }
 0x5fd   : > { %v1589_v36 = vsub.f32 %v3119_v2, %v1581_v51 }
 0x5ff   : > { %v3175_v24 = vmul.f32 %v2901_v60, %v1589_v36 }
 0x601   : > { %v1605_v26 = vmul.f32 %v3175_v24, %v3175_v24 }
 0x602   : > { %v1571_v38 = vpop.xlane.xlu0 %1570 }
 0x603   : > { %v1582_v40 = vmul.f32 0.03125, %v1571_v38  ;;  %1616 = vadd.xlane.f32.xlu1 %v1605_v26 }
 0x605   : > { %v1590_v41 = vsub.f32 %v3126_v5, %v1582_v40  ;;  %v1758_v5 = vld [vmem:[%s3141_s14 + $0x30] sm:$0xff] }
 0x606   : > { %vm1766_vm0 = vcmp.gt.f32.partialorder %v1758_v5, 0.5 }
 0x607   : > { %v3181_v42 = vmul.f32 %v2901_v60, %v1590_v41  ;;  %v1774_v35 = vsel %vm1766_vm0, 1, %v2515_v39 }
 0x609   : > { %v1606_v43 = vmul.f32 %v3181_v42, %v3181_v42 }
 0x60a   : > { %v1573_v44 = vpop.xlane.xlu1 %1572 }
 0x60b   : > { %v1583_v45 = vmul.f32 0.03125, %v1573_v44  ;;  %1618 = vadd.xlane.f32.xlu2 %v1606_v43  ;;  %v3224_v44 = vld [vmem:[%s3416_s4 + $0x8] ss:$0 sm:$0xff] }
 0x60d   : > { %v1591_v47 = vsub.f32 %v3130_v37, %v1583_v45  ;;  %v1773_v37 = vsel %vm1765_vm1, 1, %v2515_v39 }
 0x60f   : > { %v3187_v53 = vmul.f32 %v2901_v60, %v1591_v47 }
 0x611   : > { %v1607_v54 = vmul.f32 %v3187_v53, %v3187_v53 }
 0x612   : > { %v1575_v55 = vpop.xlane.xlu2 %1574 }
 0x613   : > { %v1584_v56 = vmul.f32 0.03125, %v1575_v55  ;;  %1620 = vadd.xlane.f32.xlu0 %v1607_v54 }
 0x615   : > { %v1592_v57 = vsub.f32 %v3134_v62, %v1584_v56 }
 0x617   : > { %v3193_v58 = vmul.f32 %v2901_v60, %v1592_v57  ;;  %v3231_v57 = vld [vmem:[%s3416_s4 + $0x9] ss:$0 sm:$0xff] }
 0x619   : > { %v1608_v59 = vmul.f32 %v3193_v58, %v3193_v58 }
 0x61a   : > { %v1577_v61 = vpop.xlane.xlu0 %1576  ;;  %v3211_v6 = vpop.permute.xlu2 %1783 }
 0x61b   : > { %v1585_v63 = vmul.f32 0.03125, %v1577_v61  ;;  %1622 = vadd.xlane.f32.xlu1 %v1608_v59 }
 0x61d   : > { %v1593_v0 = vsub.f32 %v3144_v46, %v1585_v63 }
 0x61f   : > { %v3200_v2 = vmul.f32 %v2901_v60, %v1593_v0 }
 0x621   : > { %v1609_v52 = vmul.f32 %v3200_v2, %v3200_v2 }
 0x622   : > { %v3209_v60 = vpop.permute.xlu1 %1780  ;;  %v3215_v62 = vpop.permute.xlu2 %1786 }
 0x623   : > { %1624 = vadd.xlane.f32.xlu2 %v1609_v52 }
 0x627   : > { %1798 = vperm.xlu0 %2431, %v1775_v8  }
 0x62a   : > { %v3213_v27 = vpop.permute.xlu1 %1789 }
 0x62d   : > { %v3217_v12 = vpop.permute.xlu0 %1777 }
 0x62e   : > { %vm1800_vm14 = vcmp.eq.s32.totalorder %v3217_v12, 1 }
 0x634   : > { %1795 = vperm.xlu1 %2432, %v1774_v35  }
 0x63b   : > { %1792 = vperm.xlu2 %2433, %v1773_v37  }
 0x658   : > { %v1611_v7 = vpop.xlane.xlu1 %1610 }
 0x659   : > { %v1626_v23 = vmul.f32 0.03125, %v1611_v7 }
 0x65b   : > { %v1634_v46 = vadd.f32 1e-05, %v1626_v23  ;;  %v2347_v23 = vld [vmem:[%s3415_s3 + $0x1a0] sm:$0xf] }
 0x65d   : > { %2490 = vrsqrt.f32 %v1634_v46  ;;  %vm1648_vm3 = vweird.f32 %v1634_v46 }
 0x660   : > { %v1613_v3 = vpop.xlane.xlu2 %1612 }
 0x661   : > { %v1627_v10 = vmul.f32 0.03125, %v1613_v3 }
 0x663   : > { %v1635_v11 = vadd.f32 1e-05, %v1627_v10  ;;  %v2491_v13 = vpop.eup %2490 }
 0x664   : > { %v1643_v39 = vmul.f32 %v2491_v13, %v1634_v46  ;;  %vm1649_vm2 = vweird.f32 %v2491_v13  ;;  %v2408_v46 = vld [vmem:[%s3415_s3 + $0x1b8] sm:$0xf0] }
 0x665   : > { %2492 = vrsqrt.f32 %v1635_v11  ;;  %vm1650_vm4 = vmor %vm1648_vm3, %vm1649_vm2  ;;  %vm1658_vm7 = vweird.f32 %v1635_v11  ;;  %vm1801_vm2 = vcmp.eq.s32.totalorder %v3209_v60, 1  ;;  %vm1802_vm3 = vcmp.eq.s32.totalorder %v3211_v6, 1 }
 0x666   : > { %v1644_v15 = vmul.f32 %v2491_v13, %v1643_v39  ;;  %v2407_v39 = vld [vmem:[%s3415_s3 + $0x180] sm:$0xf0] }
 0x668   : > { %v1645_v18 = vmul.f32 0.5, %v1644_v15 }
 0x66a   : > { %v1646_v22 = vsub.f32 1.5, %v1645_v18 }
 0x66b   : > { %v2493_v4 = vpop.eup %2492 }
 0x66c   : > { %v1653_v19 = vmul.f32 %v2493_v4, %v1635_v11  ;;  %v1647_v32 = vmul.f32 %v2491_v13, %v1646_v22  ;;  %vm1659_vm5 = vweird.f32 %v2493_v4  ;;  %v2348_v11 = vor.u32 %v2408_v46, %v2347_v23  ;;  %v2404_v23 = vld [vmem:[%s3415_s3 + $0xd8] sm:$0xf0] }
 0x66d   : > { %vm1660_vm8 = vmor %vm1658_vm7, %vm1659_vm5  ;;  %vm1803_vm5 = vcmp.eq.s32.totalorder %v3215_v62, 1 }
 0x66e   : > { %v1615_v14 = vpop.xlane.xlu0 %1614  ;;  %v1654_v48 = vmul.f32 %v2493_v4, %v1653_v19  ;;  %v1651_v26 = vsel %vm1650_vm4, %v2491_v13, %v1647_v32  ;;  %v2343_v13 = vld [vmem:[%s3415_s3 + $0x168] sm:$0xf]  ;;  %1963 = vmatpush.bf16.msrb.mxu3 %v2348_v11  ;;  %v2406_v32 = vld [vmem:[%s3415_s3 + $0x148] sm:$0xf0] }
 0x66f   : > { %v1628_v16 = vmul.f32 0.03125, %v1615_v14  ;;  %v1722_v45 = vmul.f32 %v1651_v26, %v3158_v21  ;;  %v2344_v18 = vor.u32 %v2407_v39, %v2343_v13  ;;  %v2335_v26 = vld [vmem:[%s3415_s3 + $0xf8] sm:$0xf]  ;;  %v2327_v11 = vld [vmem:[%s3415_s3 + $0x88] sm:$0xf] }
 0x670   : > { %v1655_v49 = vmul.f32 0.5, %v1654_v48  ;;  %v2403_v13 = vld [vmem:[%s3415_s3 + $0xa0] sm:$0xf0] }
 0x671   : > { %v1636_v17 = vadd.f32 1e-05, %v1628_v16  ;;  %v1733_v59 = vmul.f32 %v3224_v44, %v1722_v45 }
 0x672   : > { %v1656_v36 = vsub.f32 1.5, %v1655_v49  ;;  %1964 = vmatpush.bf16.msrb.mxu3 %v2344_v18 }
 0x673   : > { %2494 = vrsqrt.f32 %v1636_v17  ;;  %vm1668_vm9 = vweird.f32 %v1636_v17  ;;  %v3238_v9 = vadd.f32 %v3231_v57, %v1733_v59 }
 0x674   : > { %v1657_v54 = vmul.f32 %v2493_v4, %v1656_v36 }
 0x676   : > { %v1617_v20 = vpop.xlane.xlu1 %1616  ;;  %v1661_v63 = vsel %vm1660_vm8, %v2493_v4, %v1657_v54  ;;  %vm1804_vm8 = vcmp.eq.s32.totalorder %v3213_v27, 1 }
 0x677   : > { %v1629_v25 = vmul.f32 0.03125, %v1617_v20  ;;  %v1723_v35 = vmul.f32 %v1661_v63, %v3163_v29 }
 0x679   : > { %v2495_v28 = vpop.eup %2494  ;;  %v1637_v30 = vadd.f32 1e-05, %v1629_v25  ;;  %v1734_v14 = vmul.f32 %v3224_v44, %v1723_v35 }
 0x67a   : > { %v1663_v31 = vmul.f32 %v2495_v28, %v1636_v17  ;;  %vm1669_vm6 = vweird.f32 %v2495_v28 }
 0x67b   : > { %2496 = vrsqrt.f32 %v1637_v30  ;;  %vm1670_vm10 = vmor %vm1668_vm9, %vm1669_vm6  ;;  %vm1678_vm12 = vweird.f32 %v1637_v30  ;;  %v3265_v25 = vadd.f32 %v3231_v57, %v1734_v14 }
 0x67c   : > { %v1664_v34 = vmul.f32 %v2495_v28, %v1663_v31  ;;  %v2339_v31 = vld [vmem:[%s3415_s3 + $0x130] sm:$0xf] }
 0x67d   : > { %v2340_v36 = vor.u32 %v2406_v32, %v2339_v31  ;;  %v3334_v18 = vsel %vm1801_vm2, 0.0, %v3265_v25  ;;  %v2323_v32 = vld [vmem:[%s3415_s3 + $0x50] sm:$0xf] }
 0x67e   : > { %v1665_v50 = vmul.f32 0.5, %v1664_v34  ;;  %v1619_v51 = vpop.xlane.xlu2 %1618 }
 0x67f   : > { %v1630_v38 = vmul.f32 0.03125, %v1619_v51  ;;  %1965 = vmatpush.bf16.msrb.mxu3 %v2340_v36 }
 0x680   : > { %v1666_v40 = vsub.f32 1.5, %v1665_v50 }
 0x681   : > { %v2497_v41 = vpop.eup %2496  ;;  %v3219_v43 = vadd.f32 1e-05, %v1630_v38  ;;  %v2405_v38 = vld [vmem:[%s3415_s3 + $0x110] sm:$0xf0] }
 0x682   : > { %v1673_v47 = vmul.f32 %v2497_v41, %v1637_v30  ;;  %v1667_v55 = vmul.f32 %v2495_v28, %v1666_v40  ;;  %vm1679_vm11 = vweird.f32 %v2497_v41  ;;  %v1817_v40 = vsel %vm1801_vm2, -1e+09, %v3265_v25 }
 0x683   : > { %2498 = vrsqrt.f32 %v3219_v43  ;;  %vm1680_vm13 = vmor %vm1678_vm12, %vm1679_vm11  ;;  %vm1688_vm0 = vweird.f32 %v3219_v43 }
 0x684   : > { %v1674_v56 = vmul.f32 %v2497_v41, %v1673_v47  ;;  %v1671_v1 = vsel %vm1670_vm10, %v2495_v28, %v1667_v55 }
 0x685   : > { %v1724_v3 = vmul.f32 %v1671_v1, %v3169_v33  ;;  %v1816_v33 = vsel %vm1800_vm14, -1e+09, %v3238_v9 }
 0x686   : > { %v1675_v61 = vmul.f32 0.5, %v1674_v56  ;;  %v1621_v21 = vpop.xlane.xlu0 %1620  ;;  %v1824_v28 = vrot.slane %v1816_v33, 4  ;;  %v2336_v56 = vor.u32 %v2405_v38, %v2335_v26 }
 0x687   : > { %v1631_v0 = vmul.f32 0.03125, %v1621_v21  ;;  %v1735_v16 = vmul.f32 %v3224_v44, %v1724_v3 }
 0x688   : > { %v1676_v52 = vsub.f32 1.5, %v1675_v61  ;;  %v1825_v47 = vmax.f32 %v1816_v33, %v1824_v28  ;;  %1966 = vmatpush.bf16.msrb.mxu3 %v2336_v56  ;;  %v1984_v56 = vrot.slane %v3334_v18, 7 }
 0x689   : > { %v2499_v8 = vpop.eup %2498  ;;  %v3234_v5 = vadd.f32 1e-05, %v1631_v0 }
 0x68a   : > { %v1677_v37 = vmul.f32 %v2497_v41, %v1676_v52  ;;  %v1683_v7 = vmul.f32 %v2499_v8, %v3219_v43  ;;  %vm1689_vm15 = vweird.f32 %v2499_v8  ;;  %v1826_v35 = vrot.slane %v1825_v47, 2 }
 0x68b   : > { %2500 = vrsqrt.f32 %v3234_v5  ;;  %vm1690_vm1 = vmor %vm1688_vm0, %vm1689_vm15  ;;  %vm1698_vm6 = vweird.f32 %v3234_v5  ;;  %vm1901_vm15 = vcmask 1042434   ;;  %vm1903_vm0 = vcmask 1043459  }
 0x68c   : > { %v1681_v29 = vsel %vm1680_vm13, %v2497_v41, %v1677_v37  ;;  %v1684_v10 = vmul.f32 %v2499_v8, %v1683_v7  ;;  %v2331_v7 = vld [vmem:[%s3415_s3 + $0xc0] sm:$0xf]  ;;  %vm1899_vm13 = vcmask 1041409  }
 0x68d   : > { %v1725_v19 = vmul.f32 %v1681_v29, %v3175_v24  ;;  %v3275_v24 = vadd.f32 %v3231_v57, %v1735_v16  ;;  %v2332_v33 = vor.u32 %v2404_v23, %v2331_v7 }
 0x68e   : > { %v1623_v15 = vpop.xlane.xlu1 %1622  ;;  %v1685_v4 = vmul.f32 0.5, %v1684_v10 }
 0x68f   : > { %v1632_v17 = vmul.f32 0.03125, %v1623_v15  ;;  %v1736_v34 = vmul.f32 %v3224_v44, %v1725_v19  ;;  %v1818_v54 = vsel %vm1802_vm3, -1e+09, %v3275_v24  ;;  %v1827_v15 = vmax.f32 %v1825_v47, %v1826_v35  ;;  %1967 = vmatpush.bf16.msrb.mxu3 %v2332_v33 }
 0x690   : > { %v1686_v22 = vsub.f32 1.5, %v1685_v4  ;;  %v1836_v37 = vrot.slane %v1818_v54, 4  ;;  %v1810_v12 = vsel %vm1802_vm3, 0.0, %v3275_v24 }
 0x691   : > { %v2501_v20 = vpop.eup %2500  ;;  %v3262_v48 = vadd.f32 1e-05, %v1632_v17  ;;  %v3296_v59 = vadd.f32 %v3231_v57, %v1736_v34  ;;  %v1828_v34 = vrot.slane %v1827_v15, 1 }
 0x692   : > { %v1693_v30 = vmul.f32 %v2501_v20, %v3234_v5  ;;  %v1687_v49 = vmul.f32 %v2499_v8, %v1686_v22  ;;  %vm1699_vm4 = vweird.f32 %v2501_v20  ;;  %v1837_v16 = vmax.f32 %v1818_v54, %v1836_v37  ;;  %v2319_v54 = vld [vmem:[%s3415_s3 + $0x18] sm:$0xf] }
 0x693   : > { %2502 = vrsqrt.f32 %v3262_v48  ;;  %vm1700_vm7 = vmor %vm1698_vm6, %vm1699_vm4  ;;  %v1819_v5 = vsel %vm1803_vm5, -1e+09, %v3296_v59  ;;  %vm1708_vm10 = vweird.f32 %v3262_v48  ;;  %v1811_v23 = vsel %vm1803_vm5, 0.0, %v3296_v59 }
 0x694   : > { %v1694_v50 = vmul.f32 %v2501_v20, %v1693_v30  ;;  %v1691_v51 = vsel %vm1690_vm1, %v2499_v8, %v1687_v49  ;;  %v1842_v4 = vrot.slane %v1819_v5, 4  ;;  %v2402_v49 = vld [vmem:[%s3415_s3 + $0x68] sm:$0xf0]  ;;  %vm1905_vm4 = vcmask 1044484  }
 0x695   : > { %v1726_v41 = vmul.f32 %v1691_v51, %v3181_v42  ;;  %v1830_v42 = vrot.slane %v1817_v40, 4  ;;  %vm1907_vm5 = vcmask 1045509  }
 0x696   : > { %v1695_v43 = vmul.f32 0.5, %v1694_v50  ;;  %v1625_v45 = vpop.xlane.xlu2 %1624  ;;  %v1838_v50 = vrot.slane %v1837_v16, 2  ;;  %v1843_v51 = vmax.f32 %v1819_v5, %v1842_v4 }
 0x697   : > { %v1633_v55 = vmul.f32 0.03125, %v1625_v45  ;;  %v1737_v61 = vmul.f32 %v3224_v44, %v1726_v41  ;;  %v1831_v29 = vmax.f32 %v1817_v40, %v1830_v42  ;;  %v2324_v41 = vor.u32 %v2402_v49, %v2323_v32 }
 0x698   : > { %v1696_v21 = vsub.f32 1.5, %v1695_v43 }
 0x699   : > { %v2503_v63 = vpop.eup %2502  ;;  %v3300_v0 = vadd.f32 1e-05, %v1633_v55  ;;  %v3303_v1 = vadd.f32 %v3231_v57, %v1737_v61  ;;  %v1832_v28 = vrot.slane %v1831_v29, 2  ;;  %v2401_v55 = vld [vmem:[%s3415_s3 + $0x30] sm:$0xf0]  ;;  %v1799_v18 = vpop.permute.xlu0 %1798 }
 0x69a   : > { %v1697_v52 = vmul.f32 %v2501_v20, %v1696_v21  ;;  %v1703_v8 = vmul.f32 %v2503_v63, %v3262_v48  ;;  %vm1709_vm9 = vweird.f32 %v2503_v63  ;;  %v3352_v48 = vsel %vm1800_vm14, 0.0, %v3238_v9 }
 0x69b   : > { %2504 = vrsqrt.f32 %v3300_v0  ;;  %v1820_v39 = vsel %vm1804_vm8, -1e+09, %v3303_v1  ;;  %vm1710_vm12 = vmor %vm1708_vm10, %vm1709_vm9  ;;  %v1833_v43 = vmax.f32 %v1831_v29, %v1832_v28  ;;  %v2320_v35 = vor.u32 %v2401_v55, %v2319_v54 }
 0x69c   : > { %v1704_v46 = vmul.f32 %v2503_v63, %v1703_v8  ;;  %v1701_v3 = vsel %vm1700_vm7, %v2501_v20, %v1697_v52  ;;  %v2328_v20 = vor.u32 %v2403_v13, %v2327_v11  ;;  %v1848_v30 = vrot.slane %v1820_v39, 4 }
 0x69d   : > { %v1727_v10 = vmul.f32 %v1701_v3, %v3187_v53  ;;  %v1839_v52 = vmax.f32 %v1837_v16, %v1838_v50  ;;  %v1834_v37 = vrot.slane %v1833_v43, 1  ;;  %vm1718_vm1 = vweird.f32 %v3300_v0 }
 0x69e   : > { %v1705_v14 = vmul.f32 0.5, %v1704_v46  ;;  %v3328_v17 = vpop.permute.xlu2 %1792  ;;  %1968 = vmatpush.bf16.msrb.mxu3 %v2328_v20  ;;  %v1849_v45 = vmax.f32 %v1820_v39, %v1848_v30  ;;  %v1985_v46 = vrot.slane %v1810_v12, 6  ;;  %v1812_v62 = vsel %vm1804_vm8, 0.0, %v3303_v1 }
 0x69f   : > { %v1738_v53 = vmul.f32 %v3224_v44, %v1727_v10  ;;  %vm1805_vm11 = vcmp.eq.s32.totalorder %v3328_v17, 1  ;;  %v1840_v10 = vrot.slane %v1839_v52, 1  ;;  %v1835_v33 = vmax.f32 %v1833_v43, %v1834_v37 }
 0x6a0   : > { %v1706_v19 = vsub.f32 1.5, %v1705_v14  ;;  %v1850_v7 = vrot.slane %v1849_v45, 2  ;;  %v1987_v14 = vrot.slane %v1811_v23, 5  ;;  %v1986_v27 = vsel %vm1899_vm13, %v1985_v46, %v1984_v56 }
 0x6a1   : > { %v2505_v22 = vpop.eup %2504  ;;  %v1749_v31 = vadd.f32 %v3231_v57, %v1738_v53  ;;  %v1989_v1 = vrot.slane %v1812_v62, 4  ;;  %v1841_v20 = vmax.f32 %v1839_v52, %v1840_v10  ;;  %vm1807_vm6 = vcmp.eq.s32.totalorder %v1799_v18, 1 }
 0x6a2   : > { %v1707_v60 = vmul.f32 %v2503_v63, %v1706_v19  ;;  %v1713_v25 = vmul.f32 %v2505_v22, %v3300_v0  ;;  %vm1719_vm14 = vweird.f32 %v2505_v22  ;;  %1969 = vmatpush.bf16.msrb.mxu3 %v2324_v41  ;;  %v1851_v39 = vmax.f32 %v1849_v45, %v1850_v7 }
 0x6a3   : > { %v1821_v36 = vsel %vm1805_vm11, -1e+09, %v1749_v31  ;;  %vm1720_vm3 = vmor %vm1718_vm1, %vm1719_vm14  ;;  %v1813_v0 = vsel %vm1805_vm11, 0.0, %v1749_v31  ;;  %v1988_v30 = vsel %vm1901_vm15, %v1987_v14, %v1986_v27  ;;  %vm1909_vm7 = vcmask 1046534   ;;  %v2441_v14 = vld [vmem:[%s3416_s4 + $0xa] ss:$0 sm:$0xff] }
 0x6a4   : > { %v1714_v26 = vmul.f32 %v2505_v22, %v1713_v25  ;;  %v1854_v38 = vrot.slane %v1821_v36, 4  ;;  %v1711_v40 = vsel %vm1710_vm12, %v2503_v63, %v1707_v60  ;;  %v3362_v63 = vmax.f32 %v1827_v15, %v1828_v34 }
 0x6a5   : > { %v1728_v47 = vmul.f32 %v1711_v40, %v3193_v58  ;;  %v1844_v58 = vrot.slane %v1843_v51, 2  ;;  %v1852_v28 = vrot.slane %v1851_v39, 1  ;;  %v1990_v34 = vsel %vm1903_vm0, %v1989_v1, %v1988_v30 }
 0x6a6   : > { %v1715_v61 = vmul.f32 0.5, %v1714_v26  ;;  %v1855_v21 = vmax.f32 %v1821_v36, %v1854_v38  ;;  %v1796_v42 = vpop.permute.xlu1 %1795  ;;  %1970 = vmatpush.bf16.msrb.mxu3 %v2320_v35  ;;  %vm1999_vm8 = vcmask 1040384   ;;  %v1874_v54 = vpack.c.bf16 %v1841_v20, %v1841_v20 }
 0x6a7   : > { %v1739_v9 = vmul.f32 %v3224_v44, %v1728_v47  ;;  %vm1806_vm2 = vcmp.eq.s32.totalorder %v1796_v42, 1  ;;  %v1845_v3 = vmax.f32 %v1843_v51, %v1844_v58  ;;  %v1853_v38 = vmax.f32 %v1851_v39, %v1852_v28 }
 0x6a8   : > { %v1716_v8 = vsub.f32 1.5, %v1715_v61  ;;  %v1856_v24 = vrot.slane %v1855_v21, 2  ;;  %v2000_v47 = vrot.slane %v3352_v48, 7  ;;  %v1872_v61 = vpack.c.bf16 %v3362_v63, %v3362_v63 }
 0x6a9   : > { %v1750_v5 = vadd.f32 %v3231_v57, %v1739_v9  ;;  %v1846_v19 = vrot.slane %v1845_v3, 1  ;;  %v1876_v58 = vpack.c.bf16 %v1853_v38, %v1853_v38  ;;  %v1893_v48 = vunpack.c.l.b16 %v1874_v54 }
 0x6aa   : > { %v1717_v6 = vmul.f32 %v2505_v22, %v1716_v8  ;;  %v1857_v15 = vmax.f32 %v1855_v21, %v1856_v24  ;;  %v1891_v37 = vunpack.c.l.b16 %v1872_v61  ;;  %vm1911_vm9 = vcmask 1047559  }
 0x6ab   : > { %v1822_v29 = vsel %vm1806_vm2, -1e+09, %v1750_v5  ;;  %v1814_v16 = vsel %vm1806_vm2, 0.0, %v1750_v5  ;;  %v1847_v25 = vmax.f32 %v1845_v3, %v1846_v19  ;;  %v1895_v5 = vunpack.c.l.b16 %v1876_v58 }
 0x6ac   : > { %v1721_v11 = vsel %vm1720_vm3, %v2505_v22, %v1717_v6  ;;  %v1860_v59 = vrot.slane %v1822_v29, 4  ;;  %v1991_v22 = vrot.slane %v1813_v0, 3  ;;  %v1993_v31 = vrot.slane %v1814_v16, 2 }
 0x6ad   : > { %v1729_v13 = vmul.f32 %v1721_v11, %v3200_v2  ;;  %v1858_v32 = vrot.slane %v1857_v15, 1  ;;  %v1875_v12 = vpack.c.bf16 %v1847_v25, %v1847_v25 }
 0x6ae   : > { %v1861_v4 = vmax.f32 %v1822_v29, %v1860_v59  ;;  %v1992_v36 = vsel %vm1905_vm4, %v1991_v22, %v1990_v34 }
 0x6af   : > { %v1740_v53 = vmul.f32 %v3224_v44, %v1729_v13  ;;  %v1994_v40 = vsel %vm1907_vm5, %v1993_v31, %v1992_v36  ;;  %v1859_v43 = vmax.f32 %v1857_v15, %v1858_v32  ;;  %v1894_v23 = vunpack.c.l.b16 %v1875_v12 }
 0x6b0   : > { %v1862_v2 = vrot.slane %v1861_v4, 2 }
 0x6b1   : > { %v1751_v17 = vadd.f32 %v3231_v57, %v1740_v53  ;;  %v1873_v57 = vpack.c.bf16 %v1835_v33, %v1835_v33  ;;  %v1877_v8 = vpack.c.bf16 %v1859_v43, %v1859_v43 }
 0x6b2   : > { %v1863_v44 = vmax.f32 %v1861_v4, %v1862_v2 }
 0x6b3   : > { %v1815_v49 = vsel %vm1807_vm6, 0.0, %v1751_v17  ;;  %v1823_v60 = vsel %vm1807_vm6, -1e+09, %v1751_v17  ;;  %v1892_v42 = vunpack.c.l.b16 %v1873_v57  ;;  %v1896_v46 = vunpack.c.l.b16 %v1877_v8 }
 0x6b4   : > { %v1866_v50 = vrot.slane %v1823_v60, 4  ;;  %v1995_v51 = vrot.slane %v1815_v49, 1  ;;  %v1864_v26 = vrot.slane %v1863_v44, 1 }
 0x6b5   : > { %v1900_v6 = vsel %vm1899_vm13, %v1892_v42, %v1891_v37 }
 0x6b6   : > { %v1867_v41 = vmax.f32 %v1823_v60, %v1866_v50  ;;  %v1996_v45 = vsel %vm1909_vm7, %v1995_v51, %v1994_v40  ;;  %v1865_v55 = vmax.f32 %v1863_v44, %v1864_v26  ;;  %v1902_v63 = vsel %vm1901_vm15, %v1893_v48, %v1900_v6 }
 0x6b7   : > { %v2001_v56 = vrot.slane %v1996_v45, 7  ;;  %v1904_v10 = vsel %vm1903_vm0, %v1894_v23, %v1902_v63 }
 0x6b8   : > { %v1868_v21 = vrot.slane %v1867_v41, 2  ;;  %v1878_v35 = vpack.c.bf16 %v1865_v55, %v1865_v55  ;;  %v1906_v11 = vsel %vm1905_vm4, %v1895_v5, %v1904_v10 }
 0x6b9   : > { %v2002_v9 = vsel %vm1999_vm8, %v2000_v47, %v2001_v56  ;;  %v1908_v59 = vsel %vm1907_vm5, %v1896_v46, %v1906_v11 }
 0x6ba   : > { %v1869_v52 = vmax.f32 %v1867_v41, %v1868_v21  ;;  %2007 = vst [vmem:[%s3394_s7] sm:$0xff] %v2002_v9  ;;  %v1897_v3 = vunpack.c.l.b16 %v1878_v35 }
 0x6bc   : > { %v1870_v7 = vrot.slane %v1869_v52, 1  ;;  %v1910_v13 = vsel %vm1909_vm7, %v1897_v3, %v1908_v59 }
 0x6be   : > { %v1871_v24 = vmax.f32 %v1869_v52, %v1870_v7 }
 0x6c0   : > { %v1879_v29 = vpack.c.bf16 %v1871_v24, %v1871_v24 }
 0x6c2   : > { %v1898_v62 = vunpack.c.l.b16 %v1879_v29 }
 0x6c4   : > { %v1912_v0 = vsel %vm1911_vm9, %v1898_v62, %v1910_v13 }
 0x6c5   : > { %v1913_v39 = vpack.c.b16 %v1912_v0, %v1912_v0 }
 0x6c7   : > { %1971 = vmatmul.bf16.vlgmr.msrb.gmra.mxu3 %v1913_v39 }
 0x74a   : > { %v1972_v33 = vpop.f32.mrf.mxu3 }
 0x74b   : > { %v1973_v15 = vadd.f32 %v2441_v14, %v1972_v33 }
 0x74d   : > { %2008 = vst [vmem:[%s3394_s7 + $0x8] sm:$0xff] %v1973_v15 }
 0x752   : > { %v1974_v16 = vpop.f32.mrf.mxu3 }
 0x753 PF: > { %s15_s18 = sadd.s32 1, %s2512_s18  }
 0x754   : > { %p12_p5 = scmp.ge.s32.totalorder %s15_s18, 4  }
 0x756   :  { %14 = sbr.rel (!%p12_p5) target bundleno = 1 (0x1), region = 76 }

</bundles_post_ra>
